<compile_context>
chip_gen: v7x
topology: tpu7x:2x2x1
jax: 0.10.0
libtpu: 0.0.40
codegen_flags: <defaults>
</compile_context>

<pallas_src>
import functools

import jax
import jax.numpy as jnp
from jax.experimental import pallas as pl
from jax.experimental.pallas import tpu as pltpu

_LANE = 128     # vreg lane width (last dim)
_SUBLANE = 8    # f32 sublane count (second-to-last dim)


def _round_up(x, m):
    return (x + m - 1) // m * m


def _default_batch_tile(n_rows):
    """Largest power-of-two tile (<=512) that still gives >= 2 grid steps, so the
    pipeline has something to overlap and v7x can split the grid across its 2 TCs."""
    for t in (512, 256, 128, 64, 32, 16, 8):
        if n_rows >= 2 * t:
            return t
    return _round_up(max(n_rows, 1), _SUBLANE)


def _mlp_kernel(x_ref, w_ref, b_ref, o_ref, *, num_layers):
    """Whole 8-layer MLP forward for one (batch_tile, D) activation tile, fully in VMEM.

    x_ref : (batch_tile, D) f32  zero-padded activations
    w_ref : (L, D, D)       bf16 zero-padded weights (layer l = w_ref[l])
    b_ref : (L, 1, D)       f32  zero-padded biases
    o_ref : (batch_tile, D) f32
    """
    h = x_ref[...]
    for l in range(num_layers):
        # bf16 MXU inputs, f32 accumulation; bias-add + tanh stay in f32
        # (v5e has no bf16 VPU/EUP datapath). tanh runs on the EUP slot; with the
        # lane-dense D=128 hidden width its lane utilization is 4x the original 32-wide.
        acc = jnp.dot(h.astype(jnp.bfloat16), w_ref[l],
                      preferred_element_type=jnp.float32)
        acc = acc + b_ref[l]
        h = jnp.tanh(acc) if l < num_layers - 1 else acc
    o_ref[...] = h.astype(o_ref.dtype)


def pack_params(params, D, *, weight_dtype=jnp.bfloat16):
    """Stack per-layer (W, b) into one (L, D, D) weight and one (L, 1, D) bias buffer,
    zero-padded to the lane-dense width D. Weights in bf16 (MXU inputs), biases in f32."""
    L = len(params)
    w_stack = jnp.zeros((L, D, D), weight_dtype)
    b_stack = jnp.zeros((L, 1, D), jnp.float32)
    for l, (w, b) in enumerate(params):
        fan_in, fan_out = w.shape
        w_stack = w_stack.at[l, :fan_in, :fan_out].set(w.astype(weight_dtype))
        b_stack = b_stack.at[l, :, :fan_out].set(
            b.reshape(1, fan_out).astype(jnp.float32))
    return w_stack, b_stack


def mlp_forward(x, params, *, batch_tile=None):
    """x: (B, n_feature) float32. params: list of (W (in,out) f32, b (1,out) f32)."""
    B, n_feature = x.shape
    num_layers = len(params)
    n_output = params[-1][0].shape[1]

    # Common lane-dense padded width for all activation / weight dims.
    dims = [n_feature] + [w.shape[1] for (w, _) in params]
    D = max(_round_up(d, _LANE) for d in dims)

    if batch_tile is None:
        batch_tile = _default_batch_tile(B)
    batch_tile = _round_up(batch_tile, _SUBLANE)
    B_pad = _round_up(B, batch_tile)
    grid = (B_pad // batch_tile,)

    w_stack, b_stack = pack_params(params, D)

    # Zero-pad activations: padded feature columns hit zero weight rows, padded batch
    # rows are sliced away below, so results are exact.
    x_pad = jnp.zeros((B_pad, D), x.dtype).at[:B, :n_feature].set(x)

    # Explicit VMEM budget (v7x-safe): 2x-buffered x/out tiles + 2x-buffered param stacks.
    vmem_limit = 32 * 1024 * 1024
    approx_vmem = (2 * 2 * batch_tile * D * 4                       # x + out tiles (f32)
                   + 2 * (num_layers * D * D * 2 + num_layers * D * 4))  # W(bf16) + b(f32)
    assert approx_vmem < vmem_limit, (approx_vmem, vmem_limit)

    kernel = functools.partial(_mlp_kernel, num_layers=num_layers)

    out_pad = pl.pallas_call(
        kernel,
        out_shape=jax.ShapeDtypeStruct((B_pad, D), x.dtype),
        grid_spec=pltpu.PrefetchScalarGridSpec(
            num_scalar_prefetch=0,
            grid=grid,
            in_specs=[
                pl.BlockSpec((batch_tile, D), lambda i: (i, 0)),
                # Grid-invariant stacked params: constant block index -> the pipeline
                # fetches them once per core and never re-DMAs them across steps.
                pl.BlockSpec((num_layers, D, D), lambda i: (0, 0, 0)),
                pl.BlockSpec((num_layers, 1, D), lambda i: (0, 0, 0)),
            ],
            out_specs=pl.BlockSpec((batch_tile, D), lambda i: (i, 0)),
        ),
        compiler_params=pltpu.CompilerParams(
            dimension_semantics=("parallel",),   # batch tiles independent -> v7x 2-TC split
            vmem_limit_bytes=vmem_limit,
        ),
    )(x_pad, w_stack, b_stack)

    return out_pad[:B, :n_output]


def init_params(key, n_feature, n_hid1, n_hid2, n_output):
    """torch.nn.Linear-style init: U[-1/sqrt(fan_in), 1/sqrt(fan_in)].
    Weights stored transposed vs PyTorch, i.e. (in_features, out_features); biases (1, out)."""
    layer_dims = [
        (n_feature, n_hid1),   # hidden
        (n_hid1, n_hid1),      # inner1
        (n_hid1, n_hid1),      # inner2
        (n_hid1, n_hid2),      # inner3
        (n_hid2, n_hid2),      # inner4
        (n_hid2, n_hid2),      # inner5
        (n_hid2, n_hid2),      # inner6
        (n_hid2, n_output),    # out
    ]
    params = []
    for (fan_in, fan_out) in layer_dims:
        key, kw, kb = jax.random.split(key, 3)
        bound = 1.0 / (fan_in ** 0.5)
        w = jax.random.uniform(kw, (fan_in, fan_out), jnp.float32, -bound, bound)
        b = jax.random.uniform(kb, (1, fan_out), jnp.float32, -bound, bound)
        params.append((w, b))
    return params


def mlp_reference(x, params, *, matmul_dtype=jnp.float32):
    """Plain-JAX reference. matmul_dtype=bfloat16 mimics the kernel's MXU precision
    (bf16 inputs, f32 accumulation, f32 bias-add/tanh)."""
    h = x
    for i, (w, b) in enumerate(params):
        h = jnp.dot(h.astype(matmul_dtype), w.astype(matmul_dtype),
                    preferred_element_type=jnp.float32) + b
        if i < len(params) - 1:
            h = jnp.tanh(h)
    return h


if __name__ == "__main__":
    # Small-but-tileable shapes consistent with the module (pure feature-vector MLP).
    batch = 512
    n_feature, n_hid1, n_hid2, n_output = 16, 32, 32, 4

    key = jax.random.PRNGKey(0)
    key, kx = jax.random.split(key)
    x = jax.random.normal(kx, (batch, n_feature), jnp.float32)

    # Standardize like the original script's preamble; ddof=1 matches torch.std's
    # default (unbiased), unlike np.std in the original snippet.
    x = (x - x.mean(axis=0)) / jnp.std(x, axis=0, ddof=1)

    params = init_params(key, n_feature, n_hid1, n_hid2, n_output)

    # batch_tile=128 -> grid=(4,): multiple pipelined steps, even count for v7x 2-TC split.
    out = jax.block_until_ready(mlp_forward(x, params, batch_tile=128))
    assert out.shape == (batch, n_output)

    ref_mixed = mlp_reference(x, params, matmul_dtype=jnp.bfloat16)
    ref_f32 = mlp_reference(x, params, matmul_dtype=jnp.float32)
    assert jnp.allclose(out, ref_mixed, atol=1e-4, rtol=1e-4), "mismatch vs bf16-matmul reference"
    assert jnp.allclose(out, ref_f32, atol=1e-1, rtol=1e-1), "mismatch vs f32 reference"

    # Exercise the default-tile / ragged-batch path (row padding + slicing).
    out_small = jax.block_until_ready(mlp_forward(x[:10], params))
    assert out_small.shape == (10, n_output)
    assert jnp.allclose(out_small, ref_mixed[:10], atol=1e-4, rtol=1e-4), "ragged-batch mismatch"

    print("KERNEL_OK")
</pallas_src>

<mosaic_0001>
module attributes {stable_mosaic.version = 11 : i64} {
  func.func @_mlp_kernel(%arg0: i32, %arg1: memref<128x128xf32, #tpu.memory_space<vmem>>, %arg2: memref<8x128x128xbf16, #tpu.memory_space<vmem>>, %arg3: memref<8x1x128xf32, #tpu.memory_space<vmem>>, %arg4: memref<128x128xf32, #tpu.memory_space<vmem>>) attributes {dimension_semantics = [#tpu.dimension_semantics<parallel>], iteration_bounds = array<i64: 4>, scalar_prefetch = 0 : i64, scratch_operands = 0 : i64, tpu.core_type = #tpu.core_type<tc>, window_params = [{transform_indices = @transform_0, window_bounds = array<i64: 128, 128>}, {pipeline_mode = #tpu.pipeline_mode<synchronous>, transform_indices = @transform_1, window_bounds = array<i64: 8, 128, 128>}, {pipeline_mode = #tpu.pipeline_mode<synchronous>, transform_indices = @transform_2, window_bounds = array<i64: 8, 1, 128>}, {transform_indices = @transform_3, window_bounds = array<i64: 128, 128>}]} {
    %c0 = arith.constant 0 : index
    %c0_0 = arith.constant 0 : index
    %0 = vector.load %arg1[%c0, %c0_0] : memref<128x128xf32, #tpu.memory_space<vmem>>, vector<128x128xf32>
    %1 = arith.truncf %0 : vector<128x128xf32> to vector<128x128xbf16>
    %c0_1 = arith.constant 0 : index
    %c0_2 = arith.constant 0 : index
    %c0_3 = arith.constant 0 : index
    %2 = vector.load %arg2[%c0_1, %c0_2, %c0_3] : memref<8x128x128xbf16, #tpu.memory_space<vmem>>, vector<1x128x128xbf16>
    %3 = vector.shape_cast %2 : vector<1x128x128xbf16> to vector<128x128xbf16>
    %cst = arith.constant dense<0.000000e+00> : vector<128x128xf32>
    %4 = tpu.matmul %1, %3, %cst {dimension_numbers = #tpu.dot_dimension_numbers<[1], [0], [0], [1], [0, 0, 1, 1], [], []>} : vector<128x128xbf16>, vector<128x128xbf16>, vector<128x128xf32> -> vector<128x128xf32>
    %c0_4 = arith.constant 0 : index
    %c0_5 = arith.constant 0 : index
    %c0_6 = arith.constant 0 : index
    %5 = vector.load %arg3[%c0_4, %c0_5, %c0_6] : memref<8x1x128xf32, #tpu.memory_space<vmem>>, vector<1x1x128xf32>
    %6 = vector.shape_cast %5 : vector<1x1x128xf32> to vector<1x128xf32>
    %7 = vector.broadcast %6 : vector<1x128xf32> to vector<128x128xf32>
    %8 = arith.addf %4, %7 : vector<128x128xf32>
    %9 = math.tanh %8 : vector<128x128xf32>
    %10 = arith.truncf %9 : vector<128x128xf32> to vector<128x128xbf16>
    %c1 = arith.constant 1 : index
    %c0_7 = arith.constant 0 : index
    %c0_8 = arith.constant 0 : index
    %11 = vector.load %arg2[%c1, %c0_7, %c0_8] : memref<8x128x128xbf16, #tpu.memory_space<vmem>>, vector<1x128x128xbf16>
    %12 = vector.shape_cast %11 : vector<1x128x128xbf16> to vector<128x128xbf16>
    %cst_9 = arith.constant dense<0.000000e+00> : vector<128x128xf32>
    %13 = tpu.matmul %10, %12, %cst_9 {dimension_numbers = #tpu.dot_dimension_numbers<[1], [0], [0], [1], [0, 0, 1, 1], [], []>} : vector<128x128xbf16>, vector<128x128xbf16>, vector<128x128xf32> -> vector<128x128xf32>
    %c1_10 = arith.constant 1 : index
    %c0_11 = arith.constant 0 : index
    %c0_12 = arith.constant 0 : index
    %14 = vector.load %arg3[%c1_10, %c0_11, %c0_12] : memref<8x1x128xf32, #tpu.memory_space<vmem>>, vector<1x1x128xf32>
    %15 = vector.shape_cast %14 : vector<1x1x128xf32> to vector<1x128xf32>
    %16 = vector.broadcast %15 : vector<1x128xf32> to vector<128x128xf32>
    %17 = arith.addf %13, %16 : vector<128x128xf32>
    %18 = math.tanh %17 : vector<128x128xf32>
    %19 = arith.truncf %18 : vector<128x128xf32> to vector<128x128xbf16>
    %c2 = arith.constant 2 : index
    %c0_13 = arith.constant 0 : index
    %c0_14 = arith.constant 0 : index
    %20 = vector.load %arg2[%c2, %c0_13, %c0_14] : memref<8x128x128xbf16, #tpu.memory_space<vmem>>, vector<1x128x128xbf16>
    %21 = vector.shape_cast %20 : vector<1x128x128xbf16> to vector<128x128xbf16>
    %cst_15 = arith.constant dense<0.000000e+00> : vector<128x128xf32>
    %22 = tpu.matmul %19, %21, %cst_15 {dimension_numbers = #tpu.dot_dimension_numbers<[1], [0], [0], [1], [0, 0, 1, 1], [], []>} : vector<128x128xbf16>, vector<128x128xbf16>, vector<128x128xf32> -> vector<128x128xf32>
    %c2_16 = arith.constant 2 : index
    %c0_17 = arith.constant 0 : index
    %c0_18 = arith.constant 0 : index
    %23 = vector.load %arg3[%c2_16, %c0_17, %c0_18] : memref<8x1x128xf32, #tpu.memory_space<vmem>>, vector<1x1x128xf32>
    %24 = vector.shape_cast %23 : vector<1x1x128xf32> to vector<1x128xf32>
    %25 = vector.broadcast %24 : vector<1x128xf32> to vector<128x128xf32>
    %26 = arith.addf %22, %25 : vector<128x128xf32>
    %27 = math.tanh %26 : vector<128x128xf32>
    %28 = arith.truncf %27 : vector<128x128xf32> to vector<128x128xbf16>
    %c3 = arith.constant 3 : index
    %c0_19 = arith.constant 0 : index
    %c0_20 = arith.constant 0 : index
    %29 = vector.load %arg2[%c3, %c0_19, %c0_20] : memref<8x128x128xbf16, #tpu.memory_space<vmem>>, vector<1x128x128xbf16>
    %30 = vector.shape_cast %29 : vector<1x128x128xbf16> to vector<128x128xbf16>
    %cst_21 = arith.constant dense<0.000000e+00> : vector<128x128xf32>
    %31 = tpu.matmul %28, %30, %cst_21 {dimension_numbers = #tpu.dot_dimension_numbers<[1], [0], [0], [1], [0, 0, 1, 1], [], []>} : vector<128x128xbf16>, vector<128x128xbf16>, vector<128x128xf32> -> vector<128x128xf32>
    %c3_22 = arith.constant 3 : index
    %c0_23 = arith.constant 0 : index
    %c0_24 = arith.constant 0 : index
    %32 = vector.load %arg3[%c3_22, %c0_23, %c0_24] : memref<8x1x128xf32, #tpu.memory_space<vmem>>, vector<1x1x128xf32>
    %33 = vector.shape_cast %32 : vector<1x1x128xf32> to vector<1x128xf32>
    %34 = vector.broadcast %33 : vector<1x128xf32> to vector<128x128xf32>
    %35 = arith.addf %31, %34 : vector<128x128xf32>
    %36 = math.tanh %35 : vector<128x128xf32>
    %37 = arith.truncf %36 : vector<128x128xf32> to vector<128x128xbf16>
    %c4 = arith.constant 4 : index
    %c0_25 = arith.constant 0 : index
    %c0_26 = arith.constant 0 : index
    %38 = vector.load %arg2[%c4, %c0_25, %c0_26] : memref<8x128x128xbf16, #tpu.memory_space<vmem>>, vector<1x128x128xbf16>
    %39 = vector.shape_cast %38 : vector<1x128x128xbf16> to vector<128x128xbf16>
    %cst_27 = arith.constant dense<0.000000e+00> : vector<128x128xf32>
    %40 = tpu.matmul %37, %39, %cst_27 {dimension_numbers = #tpu.dot_dimension_numbers<[1], [0], [0], [1], [0, 0, 1, 1], [], []>} : vector<128x128xbf16>, vector<128x128xbf16>, vector<128x128xf32> -> vector<128x128xf32>
    %c4_28 = arith.constant 4 : index
    %c0_29 = arith.constant 0 : index
    %c0_30 = arith.constant 0 : index
    %41 = vector.load %arg3[%c4_28, %c0_29, %c0_30] : memref<8x1x128xf32, #tpu.memory_space<vmem>>, vector<1x1x128xf32>
    %42 = vector.shape_cast %41 : vector<1x1x128xf32> to vector<1x128xf32>
    %43 = vector.broadcast %42 : vector<1x128xf32> to vector<128x128xf32>
    %44 = arith.addf %40, %43 : vector<128x128xf32>
    %45 = math.tanh %44 : vector<128x128xf32>
    %46 = arith.truncf %45 : vector<128x128xf32> to vector<128x128xbf16>
    %c5 = arith.constant 5 : index
    %c0_31 = arith.constant 0 : index
    %c0_32 = arith.constant 0 : index
    %47 = vector.load %arg2[%c5, %c0_31, %c0_32] : memref<8x128x128xbf16, #tpu.memory_space<vmem>>, vector<1x128x128xbf16>
    %48 = vector.shape_cast %47 : vector<1x128x128xbf16> to vector<128x128xbf16>
    %cst_33 = arith.constant dense<0.000000e+00> : vector<128x128xf32>
    %49 = tpu.matmul %46, %48, %cst_33 {dimension_numbers = #tpu.dot_dimension_numbers<[1], [0], [0], [1], [0, 0, 1, 1], [], []>} : vector<128x128xbf16>, vector<128x128xbf16>, vector<128x128xf32> -> vector<128x128xf32>
    %c5_34 = arith.constant 5 : index
    %c0_35 = arith.constant 0 : index
    %c0_36 = arith.constant 0 : index
    %50 = vector.load %arg3[%c5_34, %c0_35, %c0_36] : memref<8x1x128xf32, #tpu.memory_space<vmem>>, vector<1x1x128xf32>
    %51 = vector.shape_cast %50 : vector<1x1x128xf32> to vector<1x128xf32>
    %52 = vector.broadcast %51 : vector<1x128xf32> to vector<128x128xf32>
    %53 = arith.addf %49, %52 : vector<128x128xf32>
    %54 = math.tanh %53 : vector<128x128xf32>
    %55 = arith.truncf %54 : vector<128x128xf32> to vector<128x128xbf16>
    %c6 = arith.constant 6 : index
    %c0_37 = arith.constant 0 : index
    %c0_38 = arith.constant 0 : index
    %56 = vector.load %arg2[%c6, %c0_37, %c0_38] : memref<8x128x128xbf16, #tpu.memory_space<vmem>>, vector<1x128x128xbf16>
    %57 = vector.shape_cast %56 : vector<1x128x128xbf16> to vector<128x128xbf16>
    %cst_39 = arith.constant dense<0.000000e+00> : vector<128x128xf32>
    %58 = tpu.matmul %55, %57, %cst_39 {dimension_numbers = #tpu.dot_dimension_numbers<[1], [0], [0], [1], [0, 0, 1, 1], [], []>} : vector<128x128xbf16>, vector<128x128xbf16>, vector<128x128xf32> -> vector<128x128xf32>
    %c6_40 = arith.constant 6 : index
    %c0_41 = arith.constant 0 : index
    %c0_42 = arith.constant 0 : index
    %59 = vector.load %arg3[%c6_40, %c0_41, %c0_42] : memref<8x1x128xf32, #tpu.memory_space<vmem>>, vector<1x1x128xf32>
    %60 = vector.shape_cast %59 : vector<1x1x128xf32> to vector<1x128xf32>
    %61 = vector.broadcast %60 : vector<1x128xf32> to vector<128x128xf32>
    %62 = arith.addf %58, %61 : vector<128x128xf32>
    %63 = math.tanh %62 : vector<128x128xf32>
    %64 = arith.truncf %63 : vector<128x128xf32> to vector<128x128xbf16>
    %c7 = arith.constant 7 : index
    %c0_43 = arith.constant 0 : index
    %c0_44 = arith.constant 0 : index
    %65 = vector.load %arg2[%c7, %c0_43, %c0_44] : memref<8x128x128xbf16, #tpu.memory_space<vmem>>, vector<1x128x128xbf16>
    %66 = vector.shape_cast %65 : vector<1x128x128xbf16> to vector<128x128xbf16>
    %cst_45 = arith.constant dense<0.000000e+00> : vector<128x128xf32>
    %67 = tpu.matmul %64, %66, %cst_45 {dimension_numbers = #tpu.dot_dimension_numbers<[1], [0], [0], [1], [0, 0, 1, 1], [], []>} : vector<128x128xbf16>, vector<128x128xbf16>, vector<128x128xf32> -> vector<128x128xf32>
    %c7_46 = arith.constant 7 : index
    %c0_47 = arith.constant 0 : index
    %c0_48 = arith.constant 0 : index
    %68 = vector.load %arg3[%c7_46, %c0_47, %c0_48] : memref<8x1x128xf32, #tpu.memory_space<vmem>>, vector<1x1x128xf32>
    %69 = vector.shape_cast %68 : vector<1x1x128xf32> to vector<1x128xf32>
    %70 = vector.broadcast %69 : vector<1x128xf32> to vector<128x128xf32>
    %71 = arith.addf %67, %70 : vector<128x128xf32>
    %c0_49 = arith.constant 0 : index
    %c0_50 = arith.constant 0 : index
    %72 = vector.load %arg4[%c0_49, %c0_50] : memref<128x128xf32, #tpu.memory_space<vmem>>, vector<128x128xf32>
    tpu.vector_store %arg4[%c0_49, %c0_50], %71 {strides = array<i32>} : memref<128x128xf32, #tpu.memory_space<vmem>>, vector<128x128xf32>,
    return
  }
  func.func @transform_0(%arg0: i32) -> (i32, i32) {
    %c0_i32 = arith.constant 0 : i32
    %c0_i32_0 = arith.constant 0 : i32
    return %arg0, %c0_i32 : i32, i32
  }
  func.func @transform_1(%arg0: i32) -> (i32, i32, i32) {
    %c0_i32 = arith.constant 0 : i32
    %c0_i32_0 = arith.constant 0 : i32
    %c0_i32_1 = arith.constant 0 : i32
    %c0_i32_2 = arith.constant 0 : i32
    return %c0_i32, %c0_i32_0, %c0_i32_1 : i32, i32, i32
  }
  func.func @transform_2(%arg0: i32) -> (i32, i32, i32) {
    %c0_i32 = arith.constant 0 : i32
    %c0_i32_0 = arith.constant 0 : i32
    %c0_i32_1 = arith.constant 0 : i32
    %c0_i32_2 = arith.constant 0 : i32
    return %c0_i32, %c0_i32_0, %c0_i32_1 : i32, i32, i32
  }
  func.func @transform_3(%arg0: i32) -> (i32, i32) {
    %c0_i32 = arith.constant 0 : i32
    %c0_i32_0 = arith.constant 0 : i32
    return %arg0, %c0_i32 : i32, i32
  }
}

</mosaic_0001>

<bundles_post_ra>
// kernel: tpu_custom_call.1
= control target key start
LH: loop header
LB: loop body
LE: loop exit
PB: predicated region body
PF: predicated region fallthrough
CT: control target
= control target key end

     0   :  { %8 = vsyncpa [#allocation3], 0  ;;  %s3188_s0 = inlined_call_operand.hbm [shape: f32[512,128], index: 0, kind: input, shape index: {}]   ;;  %s3189_s1 = inlined_call_operand.hbm [shape: bf16[8,128,128], index: 1, kind: input, shape index: {}]   ;;  %s3190_s2 = inlined_call_operand.hbm [shape: f32[8,1,128], index: 2, kind: input, shape index: {}]   ;;  %s3191_s3 = inlined_call_operand.hbm [shape: f32[512,128], index: 3, kind: output, shape index: {}]  }
   0x1   :  { %10 = vsyncpa [#allocation3 + $0x1], 0 }
   0x2   :  { %11 = vsyncpa [#allocation6], 0 }
   0x3   :  { %12 = vsyncpa [#allocation4], 0 }
   0x4   :  { %14 = vsyncpa [#allocation4 + $0x1], 0  ;;  %s2922_s12 = smov 0   ;;  %s2924_s13 = smov 0  }
   0x5   :  { %s2926_s14 = smov 0   ;;  %s2928_s15 = smov 0  }
   0x6 LB: > { %s2943_s16 = sadd.s32 4294967295, %s2888_s15   ;;  %s1893_s17 = sadd.s32 4294967294, %s2888_s15   ;;  %s2888_s15 = sphi %s2928_s15, %s3210_s15   ;;  %s2884_s14 = sphi %s2926_s14, %s3209_s14   ;;  %s2880_s13 = sphi %s2924_s13, %s3208_s13   ;;  %s2876_s12 = sphi %s2922_s12, %s3207_s12  }
   0x7   : > { %p40_p0 = scmp.ne.s32.totalorder %s2880_s13, %s2876_s12  ;;  %p3192_p1 = scmp.eq.s32.totalorder %s2943_s16, 0 }
   0x8   : > { %p112_p3 = scmp.eq.s32.totalorder %s1893_s17, 3  ;;  %p1894_p5 = scmp.ge.s32.totalorder %s2888_s15, 1 }
   0x9   : > { %p2952_p4 = por %p3192_p1, %p40_p0  ;;  %p119_p7 = scmp.lt.s32.totalorder %s2888_s15, 5 }
   0xa   : > { %p2957_p6 = por %p112_p3, %p40_p0  ;;  %s2890_s21 = smov [#allocation5]  }
   0xb   : > { %s3195_s18 = scalar_select %p2952_p4, 1, 0 }
   0xc   : > { %s3196_s19 = scalar_select %p2957_p6, 1, 0 }
   0xd   : > { %p2962_p8 = pnand %p1894_p5, %p119_p7  ;;  %s131_s22 = sshll.u32 %s2890_s21, 4  ;;  %s132_s22 = int_to_ptr.vmem [resolvable:$true] %s131_s22 }
   0xe   : > { %s2891_s24 = smov [#allocation7]   ;;  %s2732_s28 = scalar_lea.hbm %s3189_s1, 8192 }
   0xf   : > { %s3197_s20 = scalar_select %p2962_p8, 1, 0 }
  0x10   : > { %p2381_p9 = pneg %p2962_p8  ;;  %s144_s25 = sshll.u32 %s2891_s24, 4  ;;  %s2974_s25 = int_to_ptr.vmem [resolvable:$true] %s144_s25 }
  0x11   : > { %p2733_p11 = scmp.ne.s32.totalorder %s3189_s1, %s2732_s28  ;;  %p2739_p3 = scmp.lt.u32.totalorder %s2732_s28, %s3189_s1 }
  0x12   : > { %p2970_p10 = pnand %p2381_p9, %p3192_p1 }
  0x14   : > { %p2734_p12 = pneg %p2970_p10 }
  0x16   : > { %p2735_p13 = pnand %p2734_p12, %p2733_p11 }
  0x18   : > { %p2736_p0 = pneg %p2735_p13 }
  0x1a   : > { %p2741_p5 = pnand %p2739_p3, %p2736_p0 }
  0x1c   : > { %2744 = shalt.err (!%p2741_p5)
}
  0x1d   : > { %s2745_s6 = scalar_lea.vmem %s132_s22, 8192  ;;  %p2753_p2 = scmp.lt.s32.totalorder %s132_s22, %s132_s22 }
  0x1e   : > { %p2746_p7 = scmp.ne.s32.totalorder %s132_s22, %s2745_s6  ;;  %p2754_p6 = scmp.lt.s32.totalorder %s2745_s6, %s2745_s6 }
  0x20   : > { %p2748_p9 = pnand %p2746_p7, %p2734_p12  ;;  %p2755_p4 = por %p2754_p6, %p2753_p2 }
  0x22   : > { %p2749_p1 = pneg %p2748_p9 }
  0x24   : > { %p2756_p8 = pnand %p2755_p4, %p2749_p1 }
  0x26   : > { %2759 = shalt.err (!%p2756_p8)
}
  0x27   : > { %s2892_s7 = smov 64   ;;  %s2893_s8 = smov 4  }
  0x28   : > { %2384 = dma.hbm_to_vmem [thread:$0]  (!%p2970_p10), %s3189_s1, 8192, %s132_s22, [#allocation6], %s2892_s7, %s2892_s7, %s2893_s8  }
  0x29   : > { %s2760_s21 = scalar_lea.hbm %s3190_s2, 128 }
  0x2a   : > { %p2761_p11 = scmp.ne.s32.totalorder %s3190_s2, %s2760_s21  ;;  %p2767_p4 = scmp.lt.u32.totalorder %s2760_s21, %s3190_s2 }
  0x2c   : > { %p2763_p1 = pnand %p2761_p11, %p2734_p12 }
  0x2e   : > { %p2764_p2 = pneg %p2763_p1 }
  0x30   : > { %p2769_p6 = pnand %p2767_p4, %p2764_p2 }
  0x32   : > { %2772 = shalt.err (!%p2769_p6)
}
  0x33   : > { %s2773_s22 = scalar_lea.vmem %s2974_s25, 128  ;;  %p2781_p3 = scmp.lt.s32.totalorder %s2974_s25, %s2974_s25 }
  0x34   : > { %p2774_p8 = scmp.ne.s32.totalorder %s2974_s25, %s2773_s22  ;;  %p2782_p5 = scmp.lt.s32.totalorder %s2773_s22, %s2773_s22 }
  0x36   : > { %p2776_p13 = pnand %p2774_p8, %p2734_p12  ;;  %p2783_p7 = por %p2782_p5, %p2781_p3 }
  0x38   : > { %p2777_p0 = pneg %p2776_p13 }
  0x3a   : > { %p2784_p9 = pnand %p2783_p7, %p2777_p0 }
  0x3c   : > { %2787 = shalt.err (!%p2784_p9)
}
  0x3d   : > { %s2894_s29 = smov 16   ;;  %s2895_s30 = smov 1  }
  0x3e   : > { %2387 = dma.hbm_to_vmem [thread:$0]  (!%p2970_p10), %s3190_s2, 128, %s2974_s25, [#allocation6], %s2894_s29, %s2894_s29, %s2895_s30  }
  0x3f   : > { %s3024_s6 = sadd.s32 1, %s2888_s15   ;;  %s27_s8 = sadd.s32 1, %s2884_s14 }
  0x40   : > { %s24_s7 = ssub.s32 %s2888_s15, %s3024_s6  ;;  %p34_p11 = scmp.ne.s32.totalorder %s2884_s14, %s2880_s13 }
  0x41   : > { %p25_p12 = scmp.eq.s32.totalorder %s24_s7, 0  ;;  %p35_p1 = scmp.eq.s32.totalorder %s2888_s15, 0 }
  0x42   : > { %p3199_p4 = scmp.eq.s32.totalorder %s2943_s16, 3  ;;  %p2398_p8 = scmp.lt.s32.totalorder %s2888_s15, 4 }
  0x43   : > { %s3033_s9 = scalar_select %p25_p12, %s2884_s14, %s27_s8  }
  0x44   : > { %p36_p2 = por %p35_p1, %p34_p11  ;;  %p3037_p6 = por %p3199_p4, %p34_p11 }
  0x45   : > { %s158_s23 = sand.u32 1, %s2884_s14   ;;  %s1983_s25 = sshll.u32 %s2888_s15, 11 }
  0x46   : > { %s1898_s11 = sshll.u32 %s158_s23, 7  ;;  %s3047_s24 = scalar_lea.hbm %s3188_s0, %s1983_s25 }
  0x47   : > { %s162_s26 = scalar_lea.vmem [#allocation2], %s1898_s11  ;;  %p3051_p10 = pnand %p2398_p8, %p36_p2 }
  0x48   : > { %s169_s27 = sshll.u32 %s162_s26, 4  ;;  %s3055_s22 = scalar_lea.sflag [#allocation3], %s158_s23  ;;  %s3049_s27 = int_to_ptr.vmem [resolvable:$true] %s169_s27 }
  0x49   : > { %s2788_s29 = scalar_lea.hbm %s3047_s24, 2048  ;;  %p2790_p0 = pneg %p3051_p10 }
  0x4a   : > { %p2789_p13 = scmp.ne.s32.totalorder %s3047_s24, %s2788_s29  ;;  %s2793_s5 = scalar_lea.hbm %s3188_s0, 8192 }
  0x4b   : > { %p2794_p7 = scmp.lt.u32.totalorder %s3047_s24, %s3188_s0  ;;  %p2795_p9 = scmp.lt.u32.totalorder %s2793_s5, %s2788_s29 }
  0x4c   : > { %p2791_p3 = pnand %p2790_p0, %p2789_p13  ;;  %p2797_p11 = scmp.lt.u32.totalorder %s2788_s29, %s3047_s24 }
  0x4d   : > { %p2796_p12 = por %p2795_p9, %p2794_p7 }
  0x4e   : > { %p2792_p5 = pneg %p2791_p3 }
  0x4f   : > { %p2798_p1 = por %p2797_p11, %p2796_p12 }
  0x51   : > { %p2799_p2 = pnand %p2798_p1, %p2792_p5 }
  0x53   : > { %2802 = shalt.err (!%p2799_p2)
}
  0x54   : > { %s2803_s23 = scalar_lea.vmem %s3049_s27, 2048  ;;  %s2896_s11 = smov [#allocation2]  }
  0x55   : > { %p2804_p4 = scmp.ne.s32.totalorder %s3049_s27, %s2803_s23  ;;  %s2808_s25 = sshll.u32 %s2896_s11, 4  ;;  %s2809_s25 = int_to_ptr.vmem [resolvable:$false] %s2808_s25 }
  0x56   : > { %s2810_s17 = scalar_lea.vmem %s2809_s25, 4096  ;;  %p2811_p3 = scmp.lt.s32.totalorder %s3049_s27, %s2809_s25 }
  0x57   : > { %p2806_p8 = pnand %p2804_p4, %p2790_p0  ;;  %p2812_p7 = scmp.lt.s32.totalorder %s2810_s17, %s2803_s23 }
  0x59   : > { %p2807_p13 = pneg %p2806_p8  ;;  %p2813_p9 = por %p2812_p7, %p2811_p3 }
  0x5b   : > { %p2814_p12 = pnand %p2813_p9, %p2807_p13 }
  0x5d   : > { %2817 = shalt.err (!%p2814_p12)
}
  0x5e   : > { %s2897_s21 = smov 128   ;;  %s2898_s26 = smov 8  }
  0x5f   : > { %2391 = dma.hbm_to_vmem [thread:$0]  (!%p3051_p10), %s3047_s24, 2048, %s3049_s27, %s3055_s22, %s2897_s21, %s2897_s21, %s2898_s26  }
  0x60   : > { %p3202_p0 = scmp.ne.s32.totalorder %s3197_s20, 0 }
  0x61   : > { %s3086_s29 = sand.u32 (!%p3202_p0), 1, %s2880_s13   ;;  %p3203_p5 = scmp.ne.s32.totalorder (!%p3202_p0), %s3195_s18, 0 }
  0x62   : > { %181 = sbr.rel (%p3202_p0) target bundleno = 2015 (0x7df), region = 32  ;;  %s1902_s30 = sshll.u32 (!%p3202_p0), %s3086_s29, 7 }
  0x63   : > { %s184_s4 = scalar_lea.sflag (!%p3202_p0), [#allocation3], %s3086_s29  ;;  %s3092_s5 = scalar_lea.vmem (!%p3202_p0), [#allocation2], %s1902_s30 }
  0x69   : > { %2863 = dma.done.wait (%p3203_p5), %s184_s4, 2048  }
  0x6a   : > { %2865 = vsyncadd (%p3203_p5), %s184_s4, 4294965248  ;;  %p3204_p10 = scmp.eq.s32.totalorder %s2943_s16, 0 }
  0x6c   : > { %2867 = dma.done.wait (%p3204_p10), [#allocation6], 8320   ;;  %p3205_p11 = pmov %p3204_p10 }
  0x6d   : > { %v2444_v0 = vld [vmem:[#allocation5] sm:$0xff]   ;;  %v2445_v1 = vld [vmem:[#allocation5 + $0x8] sm:$0xff]   ;;  %v2446_v2 = vld [vmem:[#allocation5 + $0x10] sm:$0xff]   ;;  %s3120_s18 = scalar_lea.vmem [#allocation8], %s1902_s30  ;;  %s1984_s20 = sshll.u32 %s2943_s16, 11 }
  0x6e   : > { %2869 = vsyncadd (%p3205_p11), [#allocation6], 4294958976  ;;  %2113 = vmatprep.subr.bf16.mxu0 %v2444_v0  ;;  %v2447_v3 = vld [vmem:[#allocation5 + $0x18] sm:$0xff]   ;;  %v221_v4 = vld [vmem:[%s3092_s5] sm:$0xff]  ;;  %s1801_s24 = sshll.u32 %s3120_s18, 4  ;;  %s3140_s22 = scalar_lea.hbm %s3191_s3, %s1984_s20  ;;  %s3142_s24 = int_to_ptr.vmem [resolvable:$true] %s1801_s24 }
  0x6f   : > { %2114 = vmatpush3.bf16.msra.mxu0 %v2444_v0  ;;  %v222_v5 = vld [vmem:[%s3092_s5 + $0x8] sm:$0xff]  ;;  %v2448_v7 = vld [vmem:[#allocation5 + $0x20] sm:$0xff]   ;;  %v2454_v11 = vld [vmem:[#allocation5 + $0x50] sm:$0xff]   ;;  %s1788_s16 = scalar_lea.sflag [#allocation4], %s3086_s29  ;;  %s2818_s7 = scalar_lea.vmem %s3142_s24, 2048 }
  0x70   : > { %2115 = vmatprep.subr.bf16.mxu0 %v2445_v1  ;;  %v237_v6 = vpack.c.bf16 %v222_v5, %v221_v4  ;;  %v2449_v8 = vld [vmem:[#allocation5 + $0x28] sm:$0xff]   ;;  %v2452_v9 = vld [vmem:[#allocation5 + $0x40] sm:$0xff]   ;;  %v2450_v12 = vld [vmem:[#allocation5 + $0x30] sm:$0xff]   ;;  %p2819_p1 = scmp.ne.s32.totalorder %s3142_s24, %s2818_s7  ;;  %s2899_s8 = smov [#allocation8]  }
  0x71   : > { %v2453_v10 = vld [vmem:[#allocation5 + $0x48] sm:$0xff]   ;;  %2145 = vmatprep.subr.bf16.mxu1 %v2452_v9  ;;  %v2451_v13 = vld [vmem:[#allocation5 + $0x38] sm:$0xff]   ;;  %v223_v14 = vld [vmem:[%s3092_s5 + $0x10] sm:$0xff]  ;;  %s2822_s23 = sshll.u32 %s2899_s8, 4  ;;  %s2823_s23 = int_to_ptr.vmem [resolvable:$false] %s2822_s23 }
  0x72   : > { %2129 = vmatprep.mubr.bf16.mxu0 %v237_v6  ;;  %2146 = vmatpush3.bf16.msra.mxu1 %v2452_v9  ;;  %v224_v15 = vld [vmem:[%s3092_s5 + $0x18] sm:$0xff]  ;;  %v225_v16 = vld [vmem:[%s3092_s5 + $0x20] sm:$0xff]  ;;  %v226_v17 = vld [vmem:[%s3092_s5 + $0x28] sm:$0xff]  ;;  %p2820_p2 = pnand %p2819_p1, %p3037_p6  ;;  %s2824_s11 = scalar_lea.vmem %s2823_s23, 4096 }
  0x73   : > { %2116 = vmatpush3.bf16.msra.mxu0 %v2445_v1  ;;  %2147 = vmatprep.subr.bf16.mxu1 %v2453_v10  ;;  %v238_v18 = vpack.c.bf16 %v224_v15, %v223_v14  ;;  %v239_v19 = vpack.c.bf16 %v226_v17, %v225_v16  ;;  %v227_v20 = vld [vmem:[%s3092_s5 + $0x30] sm:$0xff]  ;;  %v228_v21 = vld [vmem:[%s3092_s5 + $0x38] sm:$0xff]  ;;  %v229_v22 = vld [vmem:[%s3092_s5 + $0x40] sm:$0xff]  ;;  %p2825_p8 = scmp.lt.s32.totalorder %s3142_s24, %s2823_s23  ;;  %p2826_p13 = scmp.lt.s32.totalorder %s2824_s11, %s2818_s7 }
  0x74   : > { %2117 = vmatprep.subr.bf16.mxu0 %v2446_v2  ;;  %v230_v23 = vld [vmem:[%s3092_s5 + $0x48] sm:$0xff]  ;;  %v240_v24 = vpack.c.bf16 %v228_v21, %v227_v20  ;;  %v231_v26 = vld [vmem:[%s3092_s5 + $0x50] sm:$0xff]  ;;  %v232_v27 = vld [vmem:[%s3092_s5 + $0x58] sm:$0xff]  ;;  %p2821_p4 = pneg %p2820_p2 }
  0x75   : > { %v241_v25 = vpack.c.bf16 %v230_v23, %v229_v22  ;;  %v233_v28 = vld [vmem:[%s3092_s5 + $0x60] sm:$0xff]  ;;  %v234_v29 = vld [vmem:[%s3092_s5 + $0x68] sm:$0xff]  ;;  %v242_v30 = vpack.c.bf16 %v232_v27, %v231_v26  ;;  %v235_v32 = vld [vmem:[%s3092_s5 + $0x70] sm:$0xff]  ;;  %p2827_p3 = por %p2826_p13, %p2825_p8 }
  0x76   : > { %2148 = vmatpush3.bf16.msra.mxu1 %v2453_v10  ;;  %v243_v31 = vpack.c.bf16 %v234_v29, %v233_v28  ;;  %v236_v33 = vld [vmem:[%s3092_s5 + $0x78] sm:$0xff]  ;;  %v2456_v36 = vld [vmem:[#allocation5 + $0x60] sm:$0xff]   ;;  %v2457_v37 = vld [vmem:[#allocation5 + $0x68] sm:$0xff]  }
  0x77   : > { %2118 = vmatpush3.bf16.msra.mxu0 %v2446_v2  ;;  %2149 = vmatprep.subr.bf16.mxu1 %v2454_v11  ;;  %v244_v34 = vpack.c.bf16 %v236_v33, %v235_v32  ;;  %v2455_v35 = vld [vmem:[#allocation5 + $0x58] sm:$0xff]   ;;  %v2458_v38 = vld [vmem:[#allocation5 + $0x70] sm:$0xff]   ;;  %v2460_v40 = vld [vmem:[#allocation5 + $0x80] sm:$0xff]   ;;  %p2828_p7 = pnand %p2827_p3, %p2821_p4 }
  0x78   : > { %2119 = vmatprep.subr.bf16.mxu0 %v2447_v3  ;;  %v2459_v39 = vld [vmem:[#allocation5 + $0x78] sm:$0xff]   ;;  %v2461_v41 = vld [vmem:[#allocation5 + $0x88] sm:$0xff]   ;;  %v2462_v42 = vld [vmem:[#allocation5 + $0x90] sm:$0xff]  }
  0x79   : > { %v2463_v43 = vld [vmem:[#allocation5 + $0x98] sm:$0xff]   ;;  %v1906_v44 = vld [vmem:[#allocation7] ss:$0 sm:$0xff] }
  0x7a   : > { %2150 = vmatpush3.bf16.msra.mxu1 %v2454_v11 }
  0x7b   : > { %2120 = vmatpush3.bf16.msra.mxu0 %v2447_v3  ;;  %2151 = vmatprep.subr.bf16.mxu1 %v2455_v35 }
  0x7c   : > { %2121 = vmatprep.subr.bf16.mxu0 %v2448_v7 }
  0x7e   : > { %2152 = vmatpush3.bf16.msra.mxu1 %v2455_v35 }
  0x7f   : > { %2122 = vmatpush3.bf16.msra.mxu0 %v2448_v7  ;;  %2153 = vmatprep.subr.bf16.mxu1 %v2456_v36 }
  0x80   : > { %2123 = vmatprep.subr.bf16.mxu0 %v2449_v8 }
  0x82   : > { %2154 = vmatpush3.bf16.msra.mxu1 %v2456_v36 }
  0x83   : > { %2124 = vmatpush3.bf16.msra.mxu0 %v2449_v8  ;;  %2155 = vmatprep.subr.bf16.mxu1 %v2457_v37 }
  0x84   : > { %2125 = vmatprep.subr.bf16.mxu0 %v2450_v12 }
  0x86   : > { %2156 = vmatpush3.bf16.msra.mxu1 %v2457_v37  ;;  %v2464_v37 = vld [vmem:[#allocation5 + $0xa0] sm:$0xff]  }
  0x87   : > { %2126 = vmatpush3.bf16.msra.mxu0 %v2450_v12  ;;  %2157 = vmatprep.subr.bf16.mxu1 %v2458_v38 }
  0x88   : > { %2127 = vmatprep.subr.bf16.mxu0 %v2451_v13 }
  0x8a   : > { %2158 = vmatpush3.bf16.msra.mxu1 %v2458_v38  ;;  %v2465_v38 = vld [vmem:[#allocation5 + $0xa8] sm:$0xff]  }
  0x8b   : > { %2128 = vmatpush3.bf16.msra.mxu0 %v2451_v13  ;;  %2159 = vmatprep.subr.bf16.mxu1 %v2459_v39 }
  0x8c   : > { %2177 = vmatprep.subr.bf16.mxu0 %v2460_v40 }
  0x8e   : > { %2130 = vmatmul.mubr.bf16.vlgmr.msra.gmra.mrb[0].mxu0 %v238_v18  ;;  %2160 = vmatpush3.bf16.msra.mxu1 %v2459_v39  ;;  %v2466_v39 = vld [vmem:[#allocation5 + $0xb0] sm:$0xff]  }
  0x8f   : > { %2133 = vmatprep.mubr.bf16.mxu0 %v239_v19  ;;  %2178 = vmatpush3.bf16.msra.mxu0 %v2460_v40  ;;  %v2467_v40 = vld [vmem:[#allocation5 + $0xb8] sm:$0xff]  }
  0x90   : > { %2179 = vmatprep.subr.bf16.mxu0 %v2461_v41 }
  0x93   : > { %2180 = vmatpush3.bf16.msra.mxu0 %v2461_v41  ;;  %v2468_v41 = vld [vmem:[#allocation5 + $0xc0] sm:$0xff]  }
  0x94   : > { %2181 = vmatprep.subr.bf16.mxu0 %v2462_v42  ;;  %2209 = vmatprep.subr.bf16.mxu1 %v2468_v41 }
  0x96   : > { %2134 = vmatmul.mubr.bf16.gmra.mrb[4].mxu0 %v240_v24 }
  0x97   : > { %2137 = vmatprep.mubr.bf16.mxu0 %v241_v25  ;;  %2182 = vmatpush3.bf16.msra.mxu0 %v2462_v42  ;;  %v2469_v42 = vld [vmem:[#allocation5 + $0xc8] sm:$0xff]  }
  0x98   : > { %2183 = vmatprep.subr.bf16.mxu0 %v2463_v43 }
  0x9b   : > { %2184 = vmatpush3.bf16.msra.mxu0 %v2463_v43  ;;  %v2470_v43 = vld [vmem:[#allocation5 + $0xd0] sm:$0xff]  }
  0x9c   : > { %2185 = vmatprep.subr.bf16.mxu0 %v2464_v37 }
  0x9e   : > { %2138 = vmatmul.mubr.bf16.gmra.mrb[8].mxu0 %v242_v30 }
  0x9f   : > { %2141 = vmatprep.mubr.bf16.mxu0 %v243_v31  ;;  %2186 = vmatpush3.bf16.msra.mxu0 %v2464_v37 }
  0xa0   : > { %2187 = vmatprep.subr.bf16.mxu0 %v2465_v38 }
  0xa3   : > { %2188 = vmatpush3.bf16.msra.mxu0 %v2465_v38  ;;  %v2472_v38 = vld [vmem:[#allocation5 + $0xe0] sm:$0xff]  }
  0xa4   : > { %2189 = vmatprep.subr.bf16.mxu0 %v2466_v39 }
  0xa6   : > { %2142 = vmatmul.mubr.bf16.gmra.mrb[12].mxu0 %v244_v34 }
  0xa7   : > { %2190 = vmatpush3.bf16.msra.mxu0 %v2466_v39  ;;  %v2473_v39 = vld [vmem:[#allocation5 + $0xe8] sm:$0xff]  }
  0xa8   : > { %2191 = vmatprep.subr.bf16.mxu0 %v2467_v40 }
  0xab   : > { %2192 = vmatpush3.bf16.msra.mxu0 %v2467_v40  ;;  %v2474_v40 = vld [vmem:[#allocation5 + $0xf0] sm:$0xff]  }
 0x161   : > { %v2131_v45 = vpop.f32.mrb[0].mxu0 }
 0x162   : > { %v359_v46 = vadd.f32 %v2131_v45, %v1906_v44  ;;  %v350_v47 = vpop.f32.mrb[1].mxu0  ;;  %v1915_v45 = vld [vmem:[#allocation7 + $0x1] ss:$0 sm:$0xff] }
 0x163   : > { %v351_v48 = vadd.f32 %v1906_v44, %v350_v47  ;;  %v2132_v49 = vpop.f32.mrb[2].mxu0 }
 0x164   : > { %2508 = vtanh.f32 %v359_v46  ;;  %v362_v50 = vadd.f32 %v2132_v49, %v1906_v44  ;;  %v353_v51 = vpop.f32.mrb[3].mxu0 }
 0x165   : > { %2510 = vtanh.f32 %v351_v48  ;;  %v354_v52 = vadd.f32 %v1906_v44, %v353_v51 }
 0x166   : > { %2512 = vtanh.f32 %v362_v50 }
 0x167   : > { %2514 = vtanh.f32 %v354_v52 }
 0x169   : > { %v2135_v53 = vpop.f32.mrb[4].mxu0 }
 0x16a   : > { %v375_v54 = vadd.f32 %v2135_v53, %v1906_v44  ;;  %v366_v55 = vpop.f32.mrb[5].mxu0 }
 0x16b   : > { %v367_v56 = vadd.f32 %v1906_v44, %v366_v55  ;;  %v2136_v57 = vpop.f32.mrb[6].mxu0 }
 0x16c   : > { %2516 = vtanh.f32 %v375_v54  ;;  %v378_v58 = vadd.f32 %v2136_v57, %v1906_v44  ;;  %v369_v59 = vpop.f32.mrb[7].mxu0 }
 0x16d   : > { %2518 = vtanh.f32 %v367_v56  ;;  %v370_v60 = vadd.f32 %v1906_v44, %v369_v59 }
 0x16e   : > { %v2509_v61 = vpop.eup %2508  ;;  %2520 = vtanh.f32 %v378_v58 }
 0x16f   : > { %v2511_v62 = vpop.eup %2510  ;;  %2522 = vtanh.f32 %v370_v60 }
 0x170   : > { %v2513_v63 = vpop.eup %2512 }
 0x171   : > { %v2515_v0 = vpop.eup %2514  ;;  %v2139_v1 = vpop.f32.mrb[8].mxu0  ;;  %v430_v2 = vpack.c.bf16 %v2513_v63, %v2509_v61 }
 0x172   : > { %v391_v3 = vadd.f32 %v2139_v1, %v1906_v44  ;;  %v382_v4 = vpop.f32.mrb[9].mxu0  ;;  %v429_v5 = vpack.c.bf16 %v2515_v0, %v2511_v62 }
 0x173   : > { %v383_v6 = vadd.f32 %v1906_v44, %v382_v4  ;;  %v2140_v7 = vpop.f32.mrb[10].mxu0 }
 0x174   : > { %2524 = vtanh.f32 %v391_v3  ;;  %v394_v8 = vadd.f32 %v2140_v7, %v1906_v44  ;;  %v385_v9 = vpop.f32.mrb[11].mxu0  ;;  %2161 = vmatprep.mubr.bf16.mxu1 %v429_v5 }
 0x175   : > { %2526 = vtanh.f32 %v383_v6  ;;  %v386_v10 = vadd.f32 %v1906_v44, %v385_v9  ;;  %2162 = vmatmul.mubr.bf16.vlgmr.msra.gmra.mrb[0].mxu1 %v430_v2 }
 0x176   : > { %v2517_v11 = vpop.eup %2516  ;;  %2528 = vtanh.f32 %v394_v8  ;;  %2210 = vmatpush3.bf16.msra.mxu1 %v2468_v41  ;;  %v2475_v41 = vld [vmem:[#allocation5 + $0xf8] sm:$0xff]  }
 0x177   : > { %v2519_v12 = vpop.eup %2518  ;;  %2530 = vtanh.f32 %v386_v10  ;;  %2211 = vmatprep.subr.bf16.mxu1 %v2469_v42 }
 0x178   : > { %v2521_v13 = vpop.eup %2520 }
 0x179   : > { %v2523_v14 = vpop.eup %2522  ;;  %v2143_v15 = vpop.f32.mrb[12].mxu0  ;;  %v432_v16 = vpack.c.bf16 %v2521_v13, %v2517_v11 }
 0x17a   : > { %v407_v17 = vadd.f32 %v2143_v15, %v1906_v44  ;;  %v398_v18 = vpop.f32.mrb[13].mxu0  ;;  %v431_v19 = vpack.c.bf16 %v2523_v14, %v2519_v12  ;;  %2212 = vmatpush3.bf16.msra.mxu1 %v2469_v42  ;;  %v2476_v42 = vld [vmem:[#allocation5 + $0x100] sm:$0xff]  }
 0x17b   : > { %v399_v20 = vadd.f32 %v1906_v44, %v398_v18  ;;  %v2144_v21 = vpop.f32.mrb[14].mxu0  ;;  %2213 = vmatprep.subr.bf16.mxu1 %v2470_v43  ;;  %2241 = vmatprep.subr.bf16.mxu0 %v2476_v42 }
 0x17c   : > { %2532 = vtanh.f32 %v407_v17  ;;  %v410_v22 = vadd.f32 %v2144_v21, %v1906_v44  ;;  %v401_v23 = vpop.f32.mrb[15].mxu0  ;;  %2165 = vmatprep.mubr.bf16.mxu1 %v431_v19 }
 0x17d   : > { %2534 = vtanh.f32 %v399_v20  ;;  %v402_v24 = vadd.f32 %v1906_v44, %v401_v23  ;;  %2166 = vmatmul.mubr.bf16.gmra.mrb[4].mxu1 %v432_v16  ;;  %v2471_v44 = vld [vmem:[#allocation5 + $0xd8] sm:$0xff]  }
 0x17e   : > { %v2525_v25 = vpop.eup %2524  ;;  %2536 = vtanh.f32 %v410_v22  ;;  %2214 = vmatpush3.bf16.msra.mxu1 %v2470_v43  ;;  %v2477_v43 = vld [vmem:[#allocation5 + $0x108] sm:$0xff]  }
 0x17f   : > { %v2527_v26 = vpop.eup %2526  ;;  %2538 = vtanh.f32 %v402_v24  ;;  %2215 = vmatprep.subr.bf16.mxu1 %v2471_v44 }
 0x180   : > { %v2529_v27 = vpop.eup %2528 }
 0x181   : > { %v2531_v28 = vpop.eup %2530  ;;  %v434_v29 = vpack.c.bf16 %v2529_v27, %v2525_v25 }
 0x182   : > { %v433_v30 = vpack.c.bf16 %v2531_v28, %v2527_v26  ;;  %2216 = vmatpush3.bf16.msra.mxu1 %v2471_v44  ;;  %v2478_v44 = vld [vmem:[#allocation5 + $0x110] sm:$0xff]  }
 0x183   : > { %2217 = vmatprep.subr.bf16.mxu1 %v2472_v38 }
 0x184   : > { %2169 = vmatprep.mubr.bf16.mxu1 %v433_v30 }
 0x185   : > { %2170 = vmatmul.mubr.bf16.gmra.mrb[8].mxu1 %v434_v29 }
 0x186   : > { %v2533_v31 = vpop.eup %2532  ;;  %2218 = vmatpush3.bf16.msra.mxu1 %v2472_v38 }
 0x187   : > { %v2535_v32 = vpop.eup %2534  ;;  %2219 = vmatprep.subr.bf16.mxu1 %v2473_v39 }
 0x188   : > { %v2537_v33 = vpop.eup %2536 }
 0x189   : > { %v2539_v34 = vpop.eup %2538  ;;  %v436_v35 = vpack.c.bf16 %v2537_v33, %v2533_v31 }
 0x18a   : > { %v435_v36 = vpack.c.bf16 %v2539_v34, %v2535_v32  ;;  %2220 = vmatpush3.bf16.msra.mxu1 %v2473_v39  ;;  %v2480_v39 = vld [vmem:[#allocation5 + $0x120] sm:$0xff]  }
 0x18b   : > { %2221 = vmatprep.subr.bf16.mxu1 %v2474_v40 }
 0x18c   : > { %2173 = vmatprep.mubr.bf16.mxu1 %v435_v36 }
 0x18d   : > { %2174 = vmatmul.mubr.bf16.gmra.mrb[12].mxu1 %v436_v35 }
 0x18e   : > { %2222 = vmatpush3.bf16.msra.mxu1 %v2474_v40  ;;  %v2481_v40 = vld [vmem:[#allocation5 + $0x128] sm:$0xff]  }
 0x18f   : > { %2223 = vmatprep.subr.bf16.mxu1 %v2475_v41 }
 0x192   : > { %2224 = vmatpush3.bf16.msra.mxu1 %v2475_v41  ;;  %v2482_v41 = vld [vmem:[#allocation5 + $0x130] sm:$0xff]  }
 0x248   : > { %v2163_v46 = vpop.f32.mrb[0].mxu1 }
 0x249   : > { %v553_v47 = vadd.f32 %v2163_v46, %v1915_v45  ;;  %v544_v48 = vpop.f32.mrb[1].mxu1  ;;  %v1924_v46 = vld [vmem:[#allocation7 + $0x2] ss:$0 sm:$0xff] }
 0x24a   : > { %v545_v49 = vadd.f32 %v1915_v45, %v544_v48  ;;  %v2164_v50 = vpop.f32.mrb[2].mxu1 }
 0x24b   : > { %2540 = vtanh.f32 %v553_v47  ;;  %v556_v51 = vadd.f32 %v2164_v50, %v1915_v45  ;;  %v547_v52 = vpop.f32.mrb[3].mxu1 }
 0x24c   : > { %2542 = vtanh.f32 %v545_v49  ;;  %v548_v53 = vadd.f32 %v1915_v45, %v547_v52 }
 0x24d   : > { %2544 = vtanh.f32 %v556_v51 }
 0x24e   : > { %2546 = vtanh.f32 %v548_v53 }
 0x250   : > { %v2167_v54 = vpop.f32.mrb[4].mxu1 }
 0x251   : > { %v569_v55 = vadd.f32 %v2167_v54, %v1915_v45  ;;  %v560_v56 = vpop.f32.mrb[5].mxu1 }
 0x252   : > { %v561_v57 = vadd.f32 %v1915_v45, %v560_v56  ;;  %v2168_v58 = vpop.f32.mrb[6].mxu1 }
 0x253   : > { %2548 = vtanh.f32 %v569_v55  ;;  %v572_v59 = vadd.f32 %v2168_v58, %v1915_v45  ;;  %v563_v60 = vpop.f32.mrb[7].mxu1 }
 0x254   : > { %2550 = vtanh.f32 %v561_v57  ;;  %v564_v61 = vadd.f32 %v1915_v45, %v563_v60 }
 0x255   : > { %v2541_v62 = vpop.eup %2540  ;;  %2552 = vtanh.f32 %v572_v59 }
 0x256   : > { %v2543_v63 = vpop.eup %2542  ;;  %2554 = vtanh.f32 %v564_v61 }
 0x257   : > { %v2545_v0 = vpop.eup %2544 }
 0x258   : > { %v2547_v1 = vpop.eup %2546  ;;  %v2171_v2 = vpop.f32.mrb[8].mxu1  ;;  %v624_v3 = vpack.c.bf16 %v2545_v0, %v2541_v62 }
 0x259   : > { %v585_v4 = vadd.f32 %v2171_v2, %v1915_v45  ;;  %v576_v5 = vpop.f32.mrb[9].mxu1  ;;  %v623_v6 = vpack.c.bf16 %v2547_v1, %v2543_v63 }
 0x25a   : > { %v577_v7 = vadd.f32 %v1915_v45, %v576_v5  ;;  %v2172_v8 = vpop.f32.mrb[10].mxu1 }
 0x25b   : > { %2556 = vtanh.f32 %v585_v4  ;;  %v588_v9 = vadd.f32 %v2172_v8, %v1915_v45  ;;  %v579_v10 = vpop.f32.mrb[11].mxu1  ;;  %2193 = vmatprep.mubr.bf16.mxu0 %v623_v6 }
 0x25c   : > { %2558 = vtanh.f32 %v577_v7  ;;  %v580_v11 = vadd.f32 %v1915_v45, %v579_v10  ;;  %2194 = vmatmul.mubr.bf16.vlgmr.msra.gmra.mrb[16].mxu0 %v624_v3 }
 0x25d   : > { %v2549_v12 = vpop.eup %2548  ;;  %2560 = vtanh.f32 %v588_v9  ;;  %2242 = vmatpush3.bf16.msra.mxu0 %v2476_v42  ;;  %v2483_v42 = vld [vmem:[#allocation5 + $0x138] sm:$0xff]  }
 0x25e   : > { %v2551_v13 = vpop.eup %2550  ;;  %2562 = vtanh.f32 %v580_v11  ;;  %2243 = vmatprep.subr.bf16.mxu0 %v2477_v43 }
 0x25f   : > { %v2553_v14 = vpop.eup %2552 }
 0x260   : > { %v2555_v15 = vpop.eup %2554  ;;  %v2175_v16 = vpop.f32.mrb[12].mxu1  ;;  %v626_v17 = vpack.c.bf16 %v2553_v14, %v2549_v12 }
 0x261   : > { %v601_v18 = vadd.f32 %v2175_v16, %v1915_v45  ;;  %v592_v19 = vpop.f32.mrb[13].mxu1  ;;  %v625_v20 = vpack.c.bf16 %v2555_v15, %v2551_v13  ;;  %2244 = vmatpush3.bf16.msra.mxu0 %v2477_v43  ;;  %v2484_v43 = vld [vmem:[#allocation5 + $0x140] sm:$0xff]  }
 0x262   : > { %v593_v21 = vadd.f32 %v1915_v45, %v592_v19  ;;  %v2176_v22 = vpop.f32.mrb[14].mxu1  ;;  %2245 = vmatprep.subr.bf16.mxu0 %v2478_v44  ;;  %2273 = vmatprep.subr.bf16.mxu1 %v2484_v43 }
 0x263   : > { %2564 = vtanh.f32 %v601_v18  ;;  %v604_v23 = vadd.f32 %v2176_v22, %v1915_v45  ;;  %v595_v24 = vpop.f32.mrb[15].mxu1  ;;  %2197 = vmatprep.mubr.bf16.mxu0 %v625_v20 }
 0x264   : > { %2566 = vtanh.f32 %v593_v21  ;;  %v596_v25 = vadd.f32 %v1915_v45, %v595_v24  ;;  %2198 = vmatmul.mubr.bf16.gmra.mrb[20].mxu0 %v626_v17  ;;  %v2479_v45 = vld [vmem:[#allocation5 + $0x118] sm:$0xff]  }
 0x265   : > { %v2557_v26 = vpop.eup %2556  ;;  %2568 = vtanh.f32 %v604_v23  ;;  %2246 = vmatpush3.bf16.msra.mxu0 %v2478_v44  ;;  %v2485_v44 = vld [vmem:[#allocation5 + $0x148] sm:$0xff]  }
 0x266   : > { %v2559_v27 = vpop.eup %2558  ;;  %2570 = vtanh.f32 %v596_v25  ;;  %2247 = vmatprep.subr.bf16.mxu0 %v2479_v45 }
 0x267   : > { %v2561_v28 = vpop.eup %2560 }
 0x268   : > { %v2563_v29 = vpop.eup %2562  ;;  %v628_v30 = vpack.c.bf16 %v2561_v28, %v2557_v26 }
 0x269   : > { %v627_v31 = vpack.c.bf16 %v2563_v29, %v2559_v27  ;;  %2248 = vmatpush3.bf16.msra.mxu0 %v2479_v45  ;;  %v2486_v45 = vld [vmem:[#allocation5 + $0x150] sm:$0xff]  }
 0x26a   : > { %2249 = vmatprep.subr.bf16.mxu0 %v2480_v39 }
 0x26b   : > { %2201 = vmatprep.mubr.bf16.mxu0 %v627_v31 }
 0x26c   : > { %2202 = vmatmul.mubr.bf16.gmra.mrb[24].mxu0 %v628_v30 }
 0x26d   : > { %v2565_v32 = vpop.eup %2564  ;;  %2250 = vmatpush3.bf16.msra.mxu0 %v2480_v39 }
 0x26e   : > { %v2567_v33 = vpop.eup %2566  ;;  %2251 = vmatprep.subr.bf16.mxu0 %v2481_v40 }
 0x26f   : > { %v2569_v34 = vpop.eup %2568 }
 0x270   : > { %v2571_v35 = vpop.eup %2570  ;;  %v630_v36 = vpack.c.bf16 %v2569_v34, %v2565_v32 }
 0x271   : > { %v629_v37 = vpack.c.bf16 %v2571_v35, %v2567_v33  ;;  %2252 = vmatpush3.bf16.msra.mxu0 %v2481_v40  ;;  %v2488_v40 = vld [vmem:[#allocation5 + $0x160] sm:$0xff]  }
 0x272   : > { %2253 = vmatprep.subr.bf16.mxu0 %v2482_v41 }
 0x273   : > { %2205 = vmatprep.mubr.bf16.mxu0 %v629_v37 }
 0x274   : > { %2206 = vmatmul.mubr.bf16.gmra.mrb[28].mxu0 %v630_v36 }
 0x275   : > { %2254 = vmatpush3.bf16.msra.mxu0 %v2482_v41  ;;  %v2489_v41 = vld [vmem:[#allocation5 + $0x168] sm:$0xff]  }
 0x276   : > { %2255 = vmatprep.subr.bf16.mxu0 %v2483_v42 }
 0x279   : > { %2256 = vmatpush3.bf16.msra.mxu0 %v2483_v42  ;;  %v2490_v42 = vld [vmem:[#allocation5 + $0x170] sm:$0xff]  }
 0x32f   : > { %v2195_v47 = vpop.f32.mrb[16].mxu0 }
 0x330   : > { %v747_v48 = vadd.f32 %v2195_v47, %v1924_v46  ;;  %v738_v49 = vpop.f32.mrb[17].mxu0  ;;  %v1933_v47 = vld [vmem:[#allocation7 + $0x3] ss:$0 sm:$0xff] }
 0x331   : > { %v739_v50 = vadd.f32 %v1924_v46, %v738_v49  ;;  %v2196_v51 = vpop.f32.mrb[18].mxu0 }
 0x332   : > { %2572 = vtanh.f32 %v747_v48  ;;  %v750_v52 = vadd.f32 %v2196_v51, %v1924_v46  ;;  %v741_v53 = vpop.f32.mrb[19].mxu0 }
 0x333   : > { %2574 = vtanh.f32 %v739_v50  ;;  %v742_v54 = vadd.f32 %v1924_v46, %v741_v53 }
 0x334   : > { %2576 = vtanh.f32 %v750_v52 }
 0x335   : > { %2578 = vtanh.f32 %v742_v54 }
 0x337   : > { %v2199_v55 = vpop.f32.mrb[20].mxu0 }
 0x338   : > { %v763_v56 = vadd.f32 %v2199_v55, %v1924_v46  ;;  %v754_v57 = vpop.f32.mrb[21].mxu0 }
 0x339   : > { %v755_v58 = vadd.f32 %v1924_v46, %v754_v57  ;;  %v2200_v59 = vpop.f32.mrb[22].mxu0 }
 0x33a   : > { %2580 = vtanh.f32 %v763_v56  ;;  %v766_v60 = vadd.f32 %v2200_v59, %v1924_v46  ;;  %v757_v61 = vpop.f32.mrb[23].mxu0 }
 0x33b   : > { %2582 = vtanh.f32 %v755_v58  ;;  %v758_v62 = vadd.f32 %v1924_v46, %v757_v61 }
 0x33c   : > { %v2573_v63 = vpop.eup %2572  ;;  %2584 = vtanh.f32 %v766_v60 }
 0x33d   : > { %v2575_v0 = vpop.eup %2574  ;;  %2586 = vtanh.f32 %v758_v62 }
 0x33e   : > { %v2577_v1 = vpop.eup %2576 }
 0x33f   : > { %v2579_v2 = vpop.eup %2578  ;;  %v2203_v3 = vpop.f32.mrb[24].mxu0  ;;  %v818_v4 = vpack.c.bf16 %v2577_v1, %v2573_v63 }
 0x340   : > { %v779_v5 = vadd.f32 %v2203_v3, %v1924_v46  ;;  %v770_v6 = vpop.f32.mrb[25].mxu0  ;;  %v817_v7 = vpack.c.bf16 %v2579_v2, %v2575_v0 }
 0x341   : > { %v771_v8 = vadd.f32 %v1924_v46, %v770_v6  ;;  %v2204_v9 = vpop.f32.mrb[26].mxu0 }
 0x342   : > { %2588 = vtanh.f32 %v779_v5  ;;  %v782_v10 = vadd.f32 %v2204_v9, %v1924_v46  ;;  %v773_v11 = vpop.f32.mrb[27].mxu0  ;;  %2225 = vmatprep.mubr.bf16.mxu1 %v817_v7 }
 0x343   : > { %2590 = vtanh.f32 %v771_v8  ;;  %v774_v12 = vadd.f32 %v1924_v46, %v773_v11  ;;  %2226 = vmatmul.mubr.bf16.vlgmr.msra.gmra.mrb[16].mxu1 %v818_v4 }
 0x344   : > { %v2581_v13 = vpop.eup %2580  ;;  %2592 = vtanh.f32 %v782_v10  ;;  %2274 = vmatpush3.bf16.msra.mxu1 %v2484_v43  ;;  %v2491_v43 = vld [vmem:[#allocation5 + $0x178] sm:$0xff]  }
 0x345   : > { %v2583_v14 = vpop.eup %2582  ;;  %2594 = vtanh.f32 %v774_v12  ;;  %2275 = vmatprep.subr.bf16.mxu1 %v2485_v44 }
 0x346   : > { %v2585_v15 = vpop.eup %2584 }
 0x347   : > { %v2587_v16 = vpop.eup %2586  ;;  %v2207_v17 = vpop.f32.mrb[28].mxu0  ;;  %v820_v18 = vpack.c.bf16 %v2585_v15, %v2581_v13 }
 0x348   : > { %v795_v19 = vadd.f32 %v2207_v17, %v1924_v46  ;;  %v786_v20 = vpop.f32.mrb[29].mxu0  ;;  %v819_v21 = vpack.c.bf16 %v2587_v16, %v2583_v14  ;;  %2276 = vmatpush3.bf16.msra.mxu1 %v2485_v44  ;;  %v2492_v44 = vld [vmem:[#allocation5 + $0x180] sm:$0xff]  }
 0x349   : > { %v787_v22 = vadd.f32 %v1924_v46, %v786_v20  ;;  %v2208_v23 = vpop.f32.mrb[30].mxu0  ;;  %2277 = vmatprep.subr.bf16.mxu1 %v2486_v45  ;;  %2305 = vmatprep.subr.bf16.mxu0 %v2492_v44 }
 0x34a   : > { %2596 = vtanh.f32 %v795_v19  ;;  %v798_v24 = vadd.f32 %v2208_v23, %v1924_v46  ;;  %v789_v25 = vpop.f32.mrb[31].mxu0  ;;  %2229 = vmatprep.mubr.bf16.mxu1 %v819_v21 }
 0x34b   : > { %2598 = vtanh.f32 %v787_v22  ;;  %v790_v26 = vadd.f32 %v1924_v46, %v789_v25  ;;  %2230 = vmatmul.mubr.bf16.gmra.mrb[20].mxu1 %v820_v18  ;;  %v2487_v46 = vld [vmem:[#allocation5 + $0x158] sm:$0xff]  }
 0x34c   : > { %v2589_v27 = vpop.eup %2588  ;;  %2600 = vtanh.f32 %v798_v24  ;;  %2278 = vmatpush3.bf16.msra.mxu1 %v2486_v45  ;;  %v2493_v45 = vld [vmem:[#allocation5 + $0x188] sm:$0xff]  }
 0x34d   : > { %v2591_v28 = vpop.eup %2590  ;;  %2602 = vtanh.f32 %v790_v26  ;;  %2279 = vmatprep.subr.bf16.mxu1 %v2487_v46 }
 0x34e   : > { %v2593_v29 = vpop.eup %2592 }
 0x34f   : > { %v2595_v30 = vpop.eup %2594  ;;  %v822_v31 = vpack.c.bf16 %v2593_v29, %v2589_v27 }
 0x350   : > { %v821_v32 = vpack.c.bf16 %v2595_v30, %v2591_v28  ;;  %2280 = vmatpush3.bf16.msra.mxu1 %v2487_v46  ;;  %v2494_v46 = vld [vmem:[#allocation5 + $0x190] sm:$0xff]  }
 0x351   : > { %2281 = vmatprep.subr.bf16.mxu1 %v2488_v40 }
 0x352   : > { %2233 = vmatprep.mubr.bf16.mxu1 %v821_v32 }
 0x353   : > { %2234 = vmatmul.mubr.bf16.gmra.mrb[24].mxu1 %v822_v31 }
 0x354   : > { %v2597_v33 = vpop.eup %2596  ;;  %2282 = vmatpush3.bf16.msra.mxu1 %v2488_v40 }
 0x355   : > { %v2599_v34 = vpop.eup %2598  ;;  %2283 = vmatprep.subr.bf16.mxu1 %v2489_v41 }
 0x356   : > { %v2601_v35 = vpop.eup %2600 }
 0x357   : > { %v2603_v36 = vpop.eup %2602  ;;  %v824_v37 = vpack.c.bf16 %v2601_v35, %v2597_v33 }
 0x358   : > { %v823_v38 = vpack.c.bf16 %v2603_v36, %v2599_v34  ;;  %2284 = vmatpush3.bf16.msra.mxu1 %v2489_v41  ;;  %v2496_v41 = vld [vmem:[#allocation5 + $0x1a0] sm:$0xff]  }
 0x359   : > { %2285 = vmatprep.subr.bf16.mxu1 %v2490_v42 }
 0x35a   : > { %2237 = vmatprep.mubr.bf16.mxu1 %v823_v38 }
 0x35b   : > { %2238 = vmatmul.mubr.bf16.gmra.mrb[28].mxu1 %v824_v37 }
 0x35c   : > { %2286 = vmatpush3.bf16.msra.mxu1 %v2490_v42  ;;  %v2497_v42 = vld [vmem:[#allocation5 + $0x1a8] sm:$0xff]  }
 0x35d   : > { %2287 = vmatprep.subr.bf16.mxu1 %v2491_v43 }
 0x360   : > { %2288 = vmatpush3.bf16.msra.mxu1 %v2491_v43  ;;  %v2498_v43 = vld [vmem:[#allocation5 + $0x1b0] sm:$0xff]  }
 0x416   : > { %v2227_v48 = vpop.f32.mrb[16].mxu1 }
 0x417   : > { %v941_v49 = vadd.f32 %v2227_v48, %v1933_v47  ;;  %v932_v50 = vpop.f32.mrb[17].mxu1  ;;  %v1942_v48 = vld [vmem:[#allocation7 + $0x4] ss:$0 sm:$0xff] }
 0x418   : > { %v933_v51 = vadd.f32 %v1933_v47, %v932_v50  ;;  %v2228_v52 = vpop.f32.mrb[18].mxu1 }
 0x419   : > { %2604 = vtanh.f32 %v941_v49  ;;  %v944_v53 = vadd.f32 %v2228_v52, %v1933_v47  ;;  %v935_v54 = vpop.f32.mrb[19].mxu1 }
 0x41a   : > { %2606 = vtanh.f32 %v933_v51  ;;  %v936_v55 = vadd.f32 %v1933_v47, %v935_v54 }
 0x41b   : > { %2608 = vtanh.f32 %v944_v53 }
 0x41c   : > { %2610 = vtanh.f32 %v936_v55 }
 0x41e   : > { %v2231_v56 = vpop.f32.mrb[20].mxu1 }
 0x41f   : > { %v957_v57 = vadd.f32 %v2231_v56, %v1933_v47  ;;  %v948_v58 = vpop.f32.mrb[21].mxu1 }
 0x420   : > { %v949_v59 = vadd.f32 %v1933_v47, %v948_v58  ;;  %v2232_v60 = vpop.f32.mrb[22].mxu1 }
 0x421   : > { %2612 = vtanh.f32 %v957_v57  ;;  %v960_v61 = vadd.f32 %v2232_v60, %v1933_v47  ;;  %v951_v62 = vpop.f32.mrb[23].mxu1 }
 0x422   : > { %2614 = vtanh.f32 %v949_v59  ;;  %v952_v63 = vadd.f32 %v1933_v47, %v951_v62 }
 0x423   : > { %v2605_v0 = vpop.eup %2604  ;;  %2616 = vtanh.f32 %v960_v61 }
 0x424   : > { %v2607_v1 = vpop.eup %2606  ;;  %2618 = vtanh.f32 %v952_v63 }
 0x425   : > { %v2609_v2 = vpop.eup %2608 }
 0x426   : > { %v2611_v3 = vpop.eup %2610  ;;  %v2235_v4 = vpop.f32.mrb[24].mxu1  ;;  %v1012_v5 = vpack.c.bf16 %v2609_v2, %v2605_v0 }
 0x427   : > { %v973_v6 = vadd.f32 %v2235_v4, %v1933_v47  ;;  %v964_v7 = vpop.f32.mrb[25].mxu1  ;;  %v1011_v8 = vpack.c.bf16 %v2611_v3, %v2607_v1 }
 0x428   : > { %v965_v9 = vadd.f32 %v1933_v47, %v964_v7  ;;  %v2236_v10 = vpop.f32.mrb[26].mxu1 }
 0x429   : > { %2620 = vtanh.f32 %v973_v6  ;;  %v976_v11 = vadd.f32 %v2236_v10, %v1933_v47  ;;  %v967_v12 = vpop.f32.mrb[27].mxu1  ;;  %2257 = vmatprep.mubr.bf16.mxu0 %v1011_v8 }
 0x42a   : > { %2622 = vtanh.f32 %v965_v9  ;;  %v968_v13 = vadd.f32 %v1933_v47, %v967_v12  ;;  %2258 = vmatmul.mubr.bf16.vlgmr.msra.gmra.mrb[32].mxu0 %v1012_v5 }
 0x42b   : > { %v2613_v14 = vpop.eup %2612  ;;  %2624 = vtanh.f32 %v976_v11  ;;  %2306 = vmatpush3.bf16.msra.mxu0 %v2492_v44  ;;  %v2499_v44 = vld [vmem:[#allocation5 + $0x1b8] sm:$0xff]  }
 0x42c   : > { %v2615_v15 = vpop.eup %2614  ;;  %2626 = vtanh.f32 %v968_v13  ;;  %2307 = vmatprep.subr.bf16.mxu0 %v2493_v45 }
 0x42d   : > { %v2617_v16 = vpop.eup %2616 }
 0x42e   : > { %v2619_v17 = vpop.eup %2618  ;;  %v2239_v18 = vpop.f32.mrb[28].mxu1  ;;  %v1014_v19 = vpack.c.bf16 %v2617_v16, %v2613_v14 }
 0x42f   : > { %v989_v20 = vadd.f32 %v2239_v18, %v1933_v47  ;;  %v980_v21 = vpop.f32.mrb[29].mxu1  ;;  %v1013_v22 = vpack.c.bf16 %v2619_v17, %v2615_v15  ;;  %2308 = vmatpush3.bf16.msra.mxu0 %v2493_v45  ;;  %v2500_v45 = vld [vmem:[#allocation5 + $0x1c0] sm:$0xff]  }
 0x430   : > { %v981_v23 = vadd.f32 %v1933_v47, %v980_v21  ;;  %v2240_v24 = vpop.f32.mrb[30].mxu1  ;;  %2309 = vmatprep.subr.bf16.mxu0 %v2494_v46  ;;  %2337 = vmatprep.subr.bf16.mxu1 %v2500_v45 }
 0x431   : > { %2628 = vtanh.f32 %v989_v20  ;;  %v992_v25 = vadd.f32 %v2240_v24, %v1933_v47  ;;  %v983_v26 = vpop.f32.mrb[31].mxu1  ;;  %2261 = vmatprep.mubr.bf16.mxu0 %v1013_v22 }
 0x432   : > { %2630 = vtanh.f32 %v981_v23  ;;  %v984_v27 = vadd.f32 %v1933_v47, %v983_v26  ;;  %2262 = vmatmul.mubr.bf16.gmra.mrb[36].mxu0 %v1014_v19  ;;  %v2495_v47 = vld [vmem:[#allocation5 + $0x198] sm:$0xff]  }
 0x433   : > { %v2621_v28 = vpop.eup %2620  ;;  %2632 = vtanh.f32 %v992_v25  ;;  %2310 = vmatpush3.bf16.msra.mxu0 %v2494_v46  ;;  %v2501_v46 = vld [vmem:[#allocation5 + $0x1c8] sm:$0xff]  }
 0x434   : > { %v2623_v29 = vpop.eup %2622  ;;  %2634 = vtanh.f32 %v984_v27  ;;  %2311 = vmatprep.subr.bf16.mxu0 %v2495_v47 }
 0x435   : > { %v2625_v30 = vpop.eup %2624 }
 0x436   : > { %v2627_v31 = vpop.eup %2626  ;;  %v1016_v32 = vpack.c.bf16 %v2625_v30, %v2621_v28 }
 0x437   : > { %v1015_v33 = vpack.c.bf16 %v2627_v31, %v2623_v29  ;;  %2312 = vmatpush3.bf16.msra.mxu0 %v2495_v47  ;;  %v2502_v47 = vld [vmem:[#allocation5 + $0x1d0] sm:$0xff]  }
 0x438   : > { %2313 = vmatprep.subr.bf16.mxu0 %v2496_v41 }
 0x439   : > { %2265 = vmatprep.mubr.bf16.mxu0 %v1015_v33 }
 0x43a   : > { %2266 = vmatmul.mubr.bf16.gmra.mrb[40].mxu0 %v1016_v32 }
 0x43b   : > { %v2629_v34 = vpop.eup %2628  ;;  %2314 = vmatpush3.bf16.msra.mxu0 %v2496_v41 }
 0x43c   : > { %v2631_v35 = vpop.eup %2630  ;;  %2315 = vmatprep.subr.bf16.mxu0 %v2497_v42 }
 0x43d   : > { %v2633_v36 = vpop.eup %2632 }
 0x43e   : > { %v2635_v37 = vpop.eup %2634  ;;  %v1018_v38 = vpack.c.bf16 %v2633_v36, %v2629_v34 }
 0x43f   : > { %v1017_v39 = vpack.c.bf16 %v2635_v37, %v2631_v35  ;;  %2316 = vmatpush3.bf16.msra.mxu0 %v2497_v42  ;;  %v2504_v42 = vld [vmem:[#allocation5 + $0x1e0] sm:$0xff]  }
 0x440   : > { %2317 = vmatprep.subr.bf16.mxu0 %v2498_v43 }
 0x441   : > { %2269 = vmatprep.mubr.bf16.mxu0 %v1017_v39 }
 0x442   : > { %2270 = vmatmul.mubr.bf16.gmra.mrb[44].mxu0 %v1018_v38 }
 0x443   : > { %2318 = vmatpush3.bf16.msra.mxu0 %v2498_v43  ;;  %v2505_v43 = vld [vmem:[#allocation5 + $0x1e8] sm:$0xff]  }
 0x444   : > { %2319 = vmatprep.subr.bf16.mxu0 %v2499_v44 }
 0x447   : > { %2320 = vmatpush3.bf16.msra.mxu0 %v2499_v44  ;;  %v2506_v44 = vld [vmem:[#allocation5 + $0x1f0] sm:$0xff]  }
 0x4fd   : > { %v2259_v49 = vpop.f32.mrb[32].mxu0 }
 0x4fe   : > { %v1135_v50 = vadd.f32 %v2259_v49, %v1942_v48  ;;  %v1126_v51 = vpop.f32.mrb[33].mxu0  ;;  %v1951_v49 = vld [vmem:[#allocation7 + $0x5] ss:$0 sm:$0xff] }
 0x4ff   : > { %v1127_v52 = vadd.f32 %v1942_v48, %v1126_v51  ;;  %v2260_v53 = vpop.f32.mrb[34].mxu0 }
 0x500   : > { %2636 = vtanh.f32 %v1135_v50  ;;  %v1138_v54 = vadd.f32 %v2260_v53, %v1942_v48  ;;  %v1129_v55 = vpop.f32.mrb[35].mxu0 }
 0x501   : > { %2638 = vtanh.f32 %v1127_v52  ;;  %v1130_v56 = vadd.f32 %v1942_v48, %v1129_v55 }
 0x502   : > { %2640 = vtanh.f32 %v1138_v54 }
 0x503   : > { %2642 = vtanh.f32 %v1130_v56 }
 0x505   : > { %v2263_v57 = vpop.f32.mrb[36].mxu0 }
 0x506   : > { %v1151_v58 = vadd.f32 %v2263_v57, %v1942_v48  ;;  %v1142_v59 = vpop.f32.mrb[37].mxu0 }
 0x507   : > { %v1143_v60 = vadd.f32 %v1942_v48, %v1142_v59  ;;  %v2264_v61 = vpop.f32.mrb[38].mxu0 }
 0x508   : > { %2644 = vtanh.f32 %v1151_v58  ;;  %v1154_v62 = vadd.f32 %v2264_v61, %v1942_v48  ;;  %v1145_v63 = vpop.f32.mrb[39].mxu0 }
 0x509   : > { %2646 = vtanh.f32 %v1143_v60  ;;  %v1146_v0 = vadd.f32 %v1942_v48, %v1145_v63 }
 0x50a   : > { %v2637_v1 = vpop.eup %2636  ;;  %2648 = vtanh.f32 %v1154_v62 }
 0x50b   : > { %v2639_v2 = vpop.eup %2638  ;;  %2650 = vtanh.f32 %v1146_v0 }
 0x50c   : > { %v2641_v3 = vpop.eup %2640 }
 0x50d   : > { %v2643_v4 = vpop.eup %2642  ;;  %v2267_v5 = vpop.f32.mrb[40].mxu0  ;;  %v1206_v6 = vpack.c.bf16 %v2641_v3, %v2637_v1 }
 0x50e   : > { %v1167_v7 = vadd.f32 %v2267_v5, %v1942_v48  ;;  %v1158_v8 = vpop.f32.mrb[41].mxu0  ;;  %v1205_v9 = vpack.c.bf16 %v2643_v4, %v2639_v2 }
 0x50f   : > { %v1159_v10 = vadd.f32 %v1942_v48, %v1158_v8  ;;  %v2268_v11 = vpop.f32.mrb[42].mxu0 }
 0x510   : > { %2652 = vtanh.f32 %v1167_v7  ;;  %v1170_v12 = vadd.f32 %v2268_v11, %v1942_v48  ;;  %v1161_v13 = vpop.f32.mrb[43].mxu0  ;;  %2289 = vmatprep.mubr.bf16.mxu1 %v1205_v9 }
 0x511   : > { %2654 = vtanh.f32 %v1159_v10  ;;  %v1162_v14 = vadd.f32 %v1942_v48, %v1161_v13  ;;  %2290 = vmatmul.mubr.bf16.vlgmr.msra.gmra.mrb[32].mxu1 %v1206_v6 }
 0x512   : > { %v2645_v15 = vpop.eup %2644  ;;  %2656 = vtanh.f32 %v1170_v12  ;;  %2338 = vmatpush3.bf16.msra.mxu1 %v2500_v45  ;;  %v2507_v45 = vld [vmem:[#allocation5 + $0x1f8] sm:$0xff]  }
 0x513   : > { %v2647_v16 = vpop.eup %2646  ;;  %2658 = vtanh.f32 %v1162_v14  ;;  %2339 = vmatprep.subr.bf16.mxu1 %v2501_v46 }
 0x514   : > { %v2649_v17 = vpop.eup %2648 }
 0x515   : > { %v2651_v18 = vpop.eup %2650  ;;  %v2271_v19 = vpop.f32.mrb[44].mxu0  ;;  %v1208_v20 = vpack.c.bf16 %v2649_v17, %v2645_v15 }
 0x516   : > { %v1183_v21 = vadd.f32 %v2271_v19, %v1942_v48  ;;  %v1174_v22 = vpop.f32.mrb[45].mxu0  ;;  %v1207_v23 = vpack.c.bf16 %v2651_v18, %v2647_v16  ;;  %2340 = vmatpush3.bf16.msra.mxu1 %v2501_v46  ;;  %v1960_v46 = vld [vmem:[#allocation7 + $0x6] ss:$0 sm:$0xff] }
 0x517   : > { %v1175_v24 = vadd.f32 %v1942_v48, %v1174_v22  ;;  %v2272_v25 = vpop.f32.mrb[46].mxu0  ;;  %2341 = vmatprep.subr.bf16.mxu1 %v2502_v47 }
 0x518   : > { %2660 = vtanh.f32 %v1183_v21  ;;  %v1186_v26 = vadd.f32 %v2272_v25, %v1942_v48  ;;  %v1177_v27 = vpop.f32.mrb[47].mxu0  ;;  %2293 = vmatprep.mubr.bf16.mxu1 %v1207_v23 }
 0x519   : > { %2662 = vtanh.f32 %v1175_v24  ;;  %v1178_v28 = vadd.f32 %v1942_v48, %v1177_v27  ;;  %2294 = vmatmul.mubr.bf16.gmra.mrb[36].mxu1 %v1208_v20  ;;  %v2503_v48 = vld [vmem:[#allocation5 + $0x1d8] sm:$0xff]  }
 0x51a   : > { %v2653_v29 = vpop.eup %2652  ;;  %2664 = vtanh.f32 %v1186_v26  ;;  %2342 = vmatpush3.bf16.msra.mxu1 %v2502_v47 }
 0x51b   : > { %v2655_v30 = vpop.eup %2654  ;;  %2666 = vtanh.f32 %v1178_v28  ;;  %2343 = vmatprep.subr.bf16.mxu1 %v2503_v48 }
 0x51c   : > { %v2657_v31 = vpop.eup %2656 }
 0x51d   : > { %v2659_v32 = vpop.eup %2658  ;;  %v1210_v33 = vpack.c.bf16 %v2657_v31, %v2653_v29 }
 0x51e   : > { %v1209_v34 = vpack.c.bf16 %v2659_v32, %v2655_v30  ;;  %2344 = vmatpush3.bf16.msra.mxu1 %v2503_v48 }
 0x51f   : > { %2345 = vmatprep.subr.bf16.mxu1 %v2504_v42 }
 0x520   : > { %2297 = vmatprep.mubr.bf16.mxu1 %v1209_v34 }
 0x521   : > { %2298 = vmatmul.mubr.bf16.gmra.mrb[40].mxu1 %v1210_v33 }
 0x522   : > { %v2661_v35 = vpop.eup %2660  ;;  %2346 = vmatpush3.bf16.msra.mxu1 %v2504_v42 }
 0x523   : > { %v2663_v36 = vpop.eup %2662  ;;  %2347 = vmatprep.subr.bf16.mxu1 %v2505_v43 }
 0x524   : > { %v2665_v37 = vpop.eup %2664 }
 0x525   : > { %v2667_v38 = vpop.eup %2666  ;;  %v1212_v39 = vpack.c.bf16 %v2665_v37, %v2661_v35 }
 0x526   : > { %v1211_v40 = vpack.c.bf16 %v2667_v38, %v2663_v36  ;;  %2348 = vmatpush3.bf16.msra.mxu1 %v2505_v43 }
 0x527   : > { %2349 = vmatprep.subr.bf16.mxu1 %v2506_v44 }
 0x528   : > { %2301 = vmatprep.mubr.bf16.mxu1 %v1211_v40 }
 0x529   : > { %2302 = vmatmul.mubr.bf16.gmra.mrb[44].mxu1 %v1212_v39 }
 0x52a   : > { %2350 = vmatpush3.bf16.msra.mxu1 %v2506_v44 }
 0x52b   : > { %2351 = vmatprep.subr.bf16.mxu1 %v2507_v45 }
 0x52e   : > { %2352 = vmatpush3.bf16.msra.mxu1 %v2507_v45 }
 0x5e4   : > { %v2291_v50 = vpop.f32.mrb[32].mxu1 }
 0x5e5   : > { %v1329_v51 = vadd.f32 %v2291_v50, %v1951_v49  ;;  %v1320_v52 = vpop.f32.mrb[33].mxu1 }
 0x5e6   : > { %v1321_v53 = vadd.f32 %v1951_v49, %v1320_v52  ;;  %v2292_v54 = vpop.f32.mrb[34].mxu1 }
 0x5e7   : > { %2668 = vtanh.f32 %v1329_v51  ;;  %v1332_v55 = vadd.f32 %v2292_v54, %v1951_v49  ;;  %v1323_v56 = vpop.f32.mrb[35].mxu1 }
 0x5e8   : > { %2670 = vtanh.f32 %v1321_v53  ;;  %v1324_v57 = vadd.f32 %v1951_v49, %v1323_v56 }
 0x5e9   : > { %2672 = vtanh.f32 %v1332_v55 }
 0x5ea   : > { %2674 = vtanh.f32 %v1324_v57 }
 0x5ec   : > { %v2295_v58 = vpop.f32.mrb[36].mxu1 }
 0x5ed   : > { %v1345_v59 = vadd.f32 %v2295_v58, %v1951_v49  ;;  %v1336_v60 = vpop.f32.mrb[37].mxu1 }
 0x5ee   : > { %v1337_v61 = vadd.f32 %v1951_v49, %v1336_v60  ;;  %v2296_v62 = vpop.f32.mrb[38].mxu1 }
 0x5ef   : > { %2676 = vtanh.f32 %v1345_v59  ;;  %v1348_v63 = vadd.f32 %v2296_v62, %v1951_v49  ;;  %v1339_v0 = vpop.f32.mrb[39].mxu1 }
 0x5f0   : > { %2678 = vtanh.f32 %v1337_v61  ;;  %v1340_v1 = vadd.f32 %v1951_v49, %v1339_v0 }
 0x5f1   : > { %v2669_v2 = vpop.eup %2668  ;;  %2680 = vtanh.f32 %v1348_v63 }
 0x5f2   : > { %v2671_v3 = vpop.eup %2670  ;;  %2682 = vtanh.f32 %v1340_v1 }
 0x5f3   : > { %v2673_v4 = vpop.eup %2672 }
 0x5f4   : > { %v2675_v5 = vpop.eup %2674  ;;  %v2299_v6 = vpop.f32.mrb[40].mxu1  ;;  %v1400_v7 = vpack.c.bf16 %v2673_v4, %v2669_v2 }
 0x5f5   : > { %v1361_v8 = vadd.f32 %v2299_v6, %v1951_v49  ;;  %v1352_v9 = vpop.f32.mrb[41].mxu1  ;;  %v1399_v10 = vpack.c.bf16 %v2675_v5, %v2671_v3 }
 0x5f6   : > { %v1353_v11 = vadd.f32 %v1951_v49, %v1352_v9  ;;  %v2300_v12 = vpop.f32.mrb[42].mxu1 }
 0x5f7   : > { %2684 = vtanh.f32 %v1361_v8  ;;  %v1364_v13 = vadd.f32 %v2300_v12, %v1951_v49  ;;  %v1355_v14 = vpop.f32.mrb[43].mxu1  ;;  %2321 = vmatprep.mubr.bf16.mxu0 %v1399_v10 }
 0x5f8   : > { %2686 = vtanh.f32 %v1353_v11  ;;  %v1356_v15 = vadd.f32 %v1951_v49, %v1355_v14  ;;  %2322 = vmatmul.mubr.bf16.vlgmr.msra.gmra.mrb[48].mxu0 %v1400_v7 }
 0x5f9   : > { %v2677_v16 = vpop.eup %2676  ;;  %2688 = vtanh.f32 %v1364_v13 }
 0x5fa   : > { %v2679_v17 = vpop.eup %2678  ;;  %2690 = vtanh.f32 %v1356_v15 }
 0x5fb   : > { %v2681_v18 = vpop.eup %2680 }
 0x5fc   : > { %v2683_v19 = vpop.eup %2682  ;;  %v2303_v20 = vpop.f32.mrb[44].mxu1  ;;  %v1402_v21 = vpack.c.bf16 %v2681_v18, %v2677_v16 }
 0x5fd   : > { %v1377_v22 = vadd.f32 %v2303_v20, %v1951_v49  ;;  %v1368_v23 = vpop.f32.mrb[45].mxu1  ;;  %v1401_v24 = vpack.c.bf16 %v2683_v19, %v2679_v17 }
 0x5fe   : > { %v1369_v25 = vadd.f32 %v1951_v49, %v1368_v23  ;;  %v2304_v26 = vpop.f32.mrb[46].mxu1 }
 0x5ff   : > { %2692 = vtanh.f32 %v1377_v22  ;;  %v1380_v27 = vadd.f32 %v2304_v26, %v1951_v49  ;;  %v1371_v28 = vpop.f32.mrb[47].mxu1  ;;  %2325 = vmatprep.mubr.bf16.mxu0 %v1401_v24 }
 0x600   : > { %2694 = vtanh.f32 %v1369_v25  ;;  %v1372_v29 = vadd.f32 %v1951_v49, %v1371_v28  ;;  %2326 = vmatmul.mubr.bf16.gmra.mrb[52].mxu0 %v1402_v21 }
 0x601   : > { %v2685_v30 = vpop.eup %2684  ;;  %2696 = vtanh.f32 %v1380_v27 }
 0x602   : > { %v2687_v31 = vpop.eup %2686  ;;  %2698 = vtanh.f32 %v1372_v29 }
 0x603   : > { %v2689_v32 = vpop.eup %2688 }
 0x604   : > { %v2691_v33 = vpop.eup %2690  ;;  %v1404_v34 = vpack.c.bf16 %v2689_v32, %v2685_v30 }
 0x605   : > { %v1403_v35 = vpack.c.bf16 %v2691_v33, %v2687_v31 }
 0x607   : > { %2329 = vmatprep.mubr.bf16.mxu0 %v1403_v35 }
 0x608   : > { %2330 = vmatmul.mubr.bf16.gmra.mrb[56].mxu0 %v1404_v34 }
 0x609   : > { %v2693_v36 = vpop.eup %2692 }
 0x60a   : > { %v2695_v37 = vpop.eup %2694 }
 0x60b   : > { %v2697_v38 = vpop.eup %2696 }
 0x60c   : > { %v2699_v39 = vpop.eup %2698  ;;  %v1406_v40 = vpack.c.bf16 %v2697_v38, %v2693_v36 }
 0x60d   : > { %v1405_v41 = vpack.c.bf16 %v2699_v39, %v2695_v37  ;;  %v1969_v39 = vld [vmem:[#allocation7 + $0x7] ss:$0 sm:$0xff] }
 0x60f   : > { %2333 = vmatprep.mubr.bf16.mxu0 %v1405_v41 }
 0x610   : > { %2334 = vmatmul.mubr.bf16.gmra.mrb[60].mxu0 %v1406_v40 }
 0x6cb   : > { %v2323_v47 = vpop.f32.mrb[48].mxu0 }
 0x6cc   : > { %v1523_v48 = vadd.f32 %v2323_v47, %v1960_v46  ;;  %v1514_v49 = vpop.f32.mrb[49].mxu0 }
 0x6cd   : > { %v1515_v50 = vadd.f32 %v1960_v46, %v1514_v49  ;;  %v2324_v51 = vpop.f32.mrb[50].mxu0 }
 0x6ce   : > { %2700 = vtanh.f32 %v1523_v48  ;;  %v1526_v52 = vadd.f32 %v2324_v51, %v1960_v46  ;;  %v1517_v53 = vpop.f32.mrb[51].mxu0 }
 0x6cf   : > { %2702 = vtanh.f32 %v1515_v50  ;;  %v1518_v54 = vadd.f32 %v1960_v46, %v1517_v53 }
 0x6d0   : > { %2704 = vtanh.f32 %v1526_v52 }
 0x6d1   : > { %2706 = vtanh.f32 %v1518_v54 }
 0x6d3   : > { %v2327_v55 = vpop.f32.mrb[52].mxu0 }
 0x6d4   : > { %v1539_v56 = vadd.f32 %v2327_v55, %v1960_v46  ;;  %v1530_v57 = vpop.f32.mrb[53].mxu0 }
 0x6d5   : > { %v1531_v58 = vadd.f32 %v1960_v46, %v1530_v57  ;;  %v2328_v59 = vpop.f32.mrb[54].mxu0 }
 0x6d6   : > { %2708 = vtanh.f32 %v1539_v56  ;;  %v1542_v60 = vadd.f32 %v2328_v59, %v1960_v46  ;;  %v1533_v61 = vpop.f32.mrb[55].mxu0 }
 0x6d7   : > { %2710 = vtanh.f32 %v1531_v58  ;;  %v1534_v62 = vadd.f32 %v1960_v46, %v1533_v61 }
 0x6d8   : > { %v2701_v63 = vpop.eup %2700  ;;  %2712 = vtanh.f32 %v1542_v60 }
 0x6d9   : > { %v2703_v0 = vpop.eup %2702  ;;  %2714 = vtanh.f32 %v1534_v62 }
 0x6da   : > { %v2705_v1 = vpop.eup %2704 }
 0x6db   : > { %v2707_v2 = vpop.eup %2706  ;;  %v2331_v3 = vpop.f32.mrb[56].mxu0  ;;  %v1594_v4 = vpack.c.bf16 %v2705_v1, %v2701_v63 }
 0x6dc   : > { %v1555_v5 = vadd.f32 %v2331_v3, %v1960_v46  ;;  %v1546_v6 = vpop.f32.mrb[57].mxu0  ;;  %v1593_v7 = vpack.c.bf16 %v2707_v2, %v2703_v0 }
 0x6dd   : > { %v1547_v8 = vadd.f32 %v1960_v46, %v1546_v6  ;;  %v2332_v9 = vpop.f32.mrb[58].mxu0 }
 0x6de   : > { %2716 = vtanh.f32 %v1555_v5  ;;  %v1558_v10 = vadd.f32 %v2332_v9, %v1960_v46  ;;  %v1549_v11 = vpop.f32.mrb[59].mxu0  ;;  %2353 = vmatprep.mubr.bf16.mxu1 %v1593_v7 }
 0x6df   : > { %2718 = vtanh.f32 %v1547_v8  ;;  %v1550_v12 = vadd.f32 %v1960_v46, %v1549_v11  ;;  %2354 = vmatmul.mubr.bf16.vlgmr.msra.gmra.mrb[48].mxu1 %v1594_v4 }
 0x6e0   : > { %v2709_v13 = vpop.eup %2708  ;;  %2720 = vtanh.f32 %v1558_v10 }
 0x6e1   : > { %v2711_v14 = vpop.eup %2710  ;;  %2722 = vtanh.f32 %v1550_v12 }
 0x6e2   : > { %v2713_v15 = vpop.eup %2712 }
 0x6e3   : > { %v2715_v16 = vpop.eup %2714  ;;  %v2335_v17 = vpop.f32.mrb[60].mxu0  ;;  %v1596_v18 = vpack.c.bf16 %v2713_v15, %v2709_v13 }
 0x6e4   : > { %v1571_v19 = vadd.f32 %v2335_v17, %v1960_v46  ;;  %v1562_v20 = vpop.f32.mrb[61].mxu0  ;;  %v1595_v21 = vpack.c.bf16 %v2715_v16, %v2711_v14 }
 0x6e5   : > { %v1563_v22 = vadd.f32 %v1960_v46, %v1562_v20  ;;  %v2336_v23 = vpop.f32.mrb[62].mxu0 }
 0x6e6   : > { %2724 = vtanh.f32 %v1571_v19  ;;  %v1574_v24 = vadd.f32 %v2336_v23, %v1960_v46  ;;  %v1565_v25 = vpop.f32.mrb[63].mxu0  ;;  %2357 = vmatprep.mubr.bf16.mxu1 %v1595_v21 }
 0x6e7   : > { %2726 = vtanh.f32 %v1563_v22  ;;  %v1566_v26 = vadd.f32 %v1960_v46, %v1565_v25  ;;  %2358 = vmatmul.mubr.bf16.gmra.mrb[52].mxu1 %v1596_v18 }
 0x6e8   : > { %v2717_v27 = vpop.eup %2716  ;;  %2728 = vtanh.f32 %v1574_v24 }
 0x6e9   : > { %v2719_v28 = vpop.eup %2718  ;;  %2730 = vtanh.f32 %v1566_v26 }
 0x6ea   : > { %v2721_v29 = vpop.eup %2720 }
 0x6eb   : > { %v2723_v30 = vpop.eup %2722  ;;  %v1598_v31 = vpack.c.bf16 %v2721_v29, %v2717_v27 }
 0x6ec   : > { %v1597_v32 = vpack.c.bf16 %v2723_v30, %v2719_v28 }
 0x6ee   : > { %2361 = vmatprep.mubr.bf16.mxu1 %v1597_v32 }
 0x6ef   : > { %2362 = vmatmul.mubr.bf16.gmra.mrb[56].mxu1 %v1598_v31 }
 0x6f0   : > { %v2725_v33 = vpop.eup %2724 }
 0x6f1   : > { %v2727_v34 = vpop.eup %2726 }
 0x6f2   : > { %v2729_v35 = vpop.eup %2728 }
 0x6f3   : > { %v2731_v36 = vpop.eup %2730  ;;  %v1600_v37 = vpack.c.bf16 %v2729_v35, %v2725_v33 }
 0x6f4   : > { %v1599_v38 = vpack.c.bf16 %v2731_v36, %v2727_v34 }
 0x6f6   : > { %2365 = vmatprep.mubr.bf16.mxu1 %v1599_v38 }
 0x6f7   : > { %2366 = vmatmul.mubr.bf16.gmra.mrb[60].mxu1 %v1600_v37 }
 0x7b2   : > { %v2355_v40 = vpop.f32.mrb[48].mxu1 }
 0x7b3   : > { %v1717_v41 = vadd.f32 %v2355_v40, %v1969_v39  ;;  %v1708_v42 = vpop.f32.mrb[49].mxu1 }
 0x7b4   : > { %v1709_v43 = vadd.f32 %v1969_v39, %v1708_v42  ;;  %v2356_v44 = vpop.f32.mrb[50].mxu1 }
 0x7b5   : > { %1773 = vst [vmem:[%s3120_s18 + $0x10] sm:$0xff] %v1717_v41  ;;  %v1720_v45 = vadd.f32 %v2356_v44, %v1969_v39  ;;  %v1711_v46 = vpop.f32.mrb[51].mxu1 }
 0x7b6   : > { %1771 = vst [vmem:[%s3120_s18] sm:$0xff] %v1709_v43  ;;  %v1712_v47 = vadd.f32 %v1969_v39, %v1711_v46 }
 0x7b7   : > { %1774 = vst [vmem:[%s3120_s18 + $0x18] sm:$0xff] %v1720_v45 }
 0x7b8   : > { %1772 = vst [vmem:[%s3120_s18 + $0x8] sm:$0xff] %v1712_v47 }
 0x7ba   : > { %v2359_v48 = vpop.f32.mrb[52].mxu1 }
 0x7bb   : > { %v1733_v49 = vadd.f32 %v2359_v48, %v1969_v39  ;;  %v1724_v50 = vpop.f32.mrb[53].mxu1 }
 0x7bc   : > { %v1725_v51 = vadd.f32 %v1969_v39, %v1724_v50  ;;  %v2360_v52 = vpop.f32.mrb[54].mxu1 }
 0x7bd   : > { %1777 = vst [vmem:[%s3120_s18 + $0x30] sm:$0xff] %v1733_v49  ;;  %v1736_v53 = vadd.f32 %v2360_v52, %v1969_v39  ;;  %v1727_v54 = vpop.f32.mrb[55].mxu1 }
 0x7be   : > { %1775 = vst [vmem:[%s3120_s18 + $0x20] sm:$0xff] %v1725_v51  ;;  %v1728_v55 = vadd.f32 %v1969_v39, %v1727_v54 }
 0x7bf   : > { %1778 = vst [vmem:[%s3120_s18 + $0x38] sm:$0xff] %v1736_v53 }
 0x7c0   : > { %1776 = vst [vmem:[%s3120_s18 + $0x28] sm:$0xff] %v1728_v55 }
 0x7c2   : > { %v2363_v56 = vpop.f32.mrb[56].mxu1 }
 0x7c3   : > { %v1749_v57 = vadd.f32 %v2363_v56, %v1969_v39  ;;  %v1740_v58 = vpop.f32.mrb[57].mxu1 }
 0x7c4   : > { %v1741_v59 = vadd.f32 %v1969_v39, %v1740_v58  ;;  %v2364_v60 = vpop.f32.mrb[58].mxu1 }
 0x7c5   : > { %1781 = vst [vmem:[%s3120_s18 + $0x50] sm:$0xff] %v1749_v57  ;;  %v1752_v61 = vadd.f32 %v2364_v60, %v1969_v39  ;;  %v1743_v62 = vpop.f32.mrb[59].mxu1 }
 0x7c6   : > { %1779 = vst [vmem:[%s3120_s18 + $0x40] sm:$0xff] %v1741_v59  ;;  %v1744_v63 = vadd.f32 %v1969_v39, %v1743_v62 }
 0x7c7   : > { %1782 = vst [vmem:[%s3120_s18 + $0x58] sm:$0xff] %v1752_v61 }
 0x7c8   : > { %1780 = vst [vmem:[%s3120_s18 + $0x48] sm:$0xff] %v1744_v63 }
 0x7ca   : > { %v2367_v0 = vpop.f32.mrb[60].mxu1 }
 0x7cb   : > { %v1765_v1 = vadd.f32 %v2367_v0, %v1969_v39  ;;  %v1756_v2 = vpop.f32.mrb[61].mxu1 }
 0x7cc   : > { %v1757_v3 = vadd.f32 %v1969_v39, %v1756_v2  ;;  %v2368_v4 = vpop.f32.mrb[62].mxu1 }
 0x7cd   : > { %1785 = vst [vmem:[%s3120_s18 + $0x70] sm:$0xff] %v1765_v1  ;;  %v1768_v5 = vadd.f32 %v2368_v4, %v1969_v39  ;;  %v1759_v6 = vpop.f32.mrb[63].mxu1 }
 0x7ce   : > { %1783 = vst [vmem:[%s3120_s18 + $0x60] sm:$0xff] %v1757_v3  ;;  %v1760_v7 = vadd.f32 %v1969_v39, %v1759_v6 }
 0x7cf   : > { %1786 = vst [vmem:[%s3120_s18 + $0x78] sm:$0xff] %v1768_v5 }
 0x7d0   : > { %1784 = vst [vmem:[%s3120_s18 + $0x68] sm:$0xff] %v1760_v7 }
 0x7d1   : > { %2831 = shalt.err (!%p2828_p7)
}
 0x7d2   : > { %s2832_s25 = scalar_lea.hbm %s3140_s22, 2048  ;;  %s2836_s26 = scalar_lea.hbm %s3191_s3, 8192 }
 0x7d3   : > { %p2833_p9 = scmp.ne.s32.totalorder %s3140_s22, %s2832_s25  ;;  %p2837_p5 = scmp.lt.u32.totalorder %s3140_s22, %s3191_s3 }
 0x7d4   : > { %p2838_p10 = scmp.lt.u32.totalorder %s2836_s26, %s2832_s25  ;;  %p2840_p1 = scmp.lt.u32.totalorder %s2832_s25, %s3140_s22 }
 0x7d5   : > { %p2834_p12 = pnand %p2833_p9, %p3037_p6 }
 0x7d6   : > { %p2839_p11 = por %p2838_p10, %p2837_p5 }
 0x7d7   : > { %p2835_p0 = pneg %p2834_p12 }
 0x7d8   : > { %p2841_p2 = por %p2840_p1, %p2839_p11 }
 0x7da   : > { %p2842_p4 = pnand %p2841_p2, %p2835_p0 }
 0x7dc   : > { %2845 = shalt.err (!%p2842_p4)
}
 0x7dd   : > { %s2900_s5 = smov 128   ;;  %s2901_s18 = smov 8  }
 0x7de   : > { %2379 = dma.vmem_to_hbm [thread:$0]  (%p3037_p6), %s3142_s24, 2048, %s3140_s22, %s1788_s16, %s2900_s5, %s2900_s5, %s2901_s18  }
 0x7df PF: > { %p2401_p8 = scmp.ge.s32.totalorder %s2888_s15, 2  ;;  %s1816_s20 = sand.u32 1, %s2876_s12  }
 0x7e0   : > { %p3206_p13 = scmp.ne.s32.totalorder %s3196_s19, 0  ;;  %s1817_s27 = scalar_lea.sflag [#allocation4], %s1816_s20 }
 0x7e2   : > { %p2393_p3 = pnand %p2401_p8, %p3206_p13 }
 0x7e4   : > { %2871 = dma.done.wait (!%p2393_p3), %s1817_s27, 2048  }
 0x7e5   : > { %2873 = vsyncadd (!%p2393_p3), %s1817_s27, 4294965248  ;;  %p17_p7 = scmp.ge.s32.totalorder %s3024_s6, 6   ;;  %s3207_s12 = smov %s2880_s13 }
 0x7e6   : > { %s3208_s13 = smov %s2884_s14  ;;  %s3209_s14 = smov %s3033_s9 }
 0x7e7   : > { %s3210_s15 = smov %s3024_s6  ;;  %19 = sbr.rel (!%p17_p7) target bundleno = 6 (0x6), region = 99 }
 0x7ee   :  { %1822 = vsyncpa [#allocation3], 1 }
 0x7ef   :  { %1824 = vsyncpa [#allocation3 + $0x1], 1 }
 0x7f0   :  { %1825 = vsyncpa [#allocation6], 1 }
 0x7f1   :  { %1826 = vsyncpa [#allocation4], 1 }
 0x7f2   :  { %1828 = vsyncpa [#allocation4 + $0x1], 1 }

</bundles_post_ra>
